<compile_context>
chip_gen: v7x
topology: tpu7x:2x2x1
jax: 0.10.0
libtpu: 0.0.40
codegen_flags: <defaults>
</compile_context>

<pallas_src>
import jax
import jax.numpy as jnp
import numpy as np
from jax.experimental import pallas as pl
from jax.experimental.pallas import tpu as pltpu

EPS = 1e-5
_VPU_PROJ_MAX_CIN = 16      # unroll tiny contractions on the VPU; MXU above this
_MAX_TILE = 2048            # lane-tile cap (blocks here are only a few KB each)


def _choose_tile(hw, max_tile=_MAX_TILE):
    """Largest divisor of hw that is a multiple of 128 and <= max_tile.

    Falls back to the full spatial extent (always a legal block: last dim ==
    full array dim) if no such divisor exists.
    """
    best = hw
    t = 128
    while t <= min(hw, max_tile):
        if hw % t == 0:
            best = t
        t += 128
    return best


def _project(w_t, v):
    """(C_out, C_in) x (C_in, TM) -> (C_out, TM) 1x1-conv projection.

    For the tiny channel counts of an attention gate this is cheaper as a few
    broadcast multiply-adds on the VPU than as a K=C_in MXU matmul (a couple
    of percent MXU utilization and a degenerate (*,1) layout for the psi
    column).  Falls back to the MXU for larger channel counts.
    """
    c_out, c_in = w_t.shape
    if c_in <= _VPU_PROJ_MAX_CIN:
        acc = w_t[:, 0:1] * v[0:1, :]
        for k in range(1, c_in):
            acc = acc + w_t[:, k:k + 1] * v[k:k + 1, :]
        return acc
    return jnp.dot(w_t, v, preferred_element_type=jnp.float32)


# --------------------------- pass 1: g1 / x1 stats ---------------------------
def _stats_gx_kernel(g_ref, x_ref, wg_ref, wx_ref,
                     sumg_ref, sqg_ref, sumx_ref, sqx_ref):
    @pl.when((pl.program_id(0) == 0) & (pl.program_id(1) == 0))
    def _():
        sumg_ref[...] = jnp.zeros_like(sumg_ref)
        sqg_ref[...] = jnp.zeros_like(sqg_ref)
        sumx_ref[...] = jnp.zeros_like(sumx_ref)
        sqx_ref[...] = jnp.zeros_like(sqx_ref)

    g1 = _project(wg_ref[...], g_ref[0])     # (F_int, TM)
    x1 = _project(wx_ref[...], x_ref[0])     # (F_int, TM)
    sumg_ref[...] += jnp.sum(g1, axis=1, keepdims=True)
    sqg_ref[...] += jnp.sum(g1 * g1, axis=1, keepdims=True)
    sumx_ref[...] += jnp.sum(x1, axis=1, keepdims=True)
    sqx_ref[...] += jnp.sum(x1 * x1, axis=1, keepdims=True)


# ---------------------- pass 2: pre-BN psi column + stats --------------------
def _psi_pre_kernel(g_ref, x_ref, wg_ref, wx_ref, wp_ref,
                    ag_ref, bg_ref, ax_ref, bx_ref,
                    p_ref, sump_ref, sqp_ref):
    @pl.when((pl.program_id(0) == 0) & (pl.program_id(1) == 0))
    def _():
        sump_ref[...] = jnp.zeros_like(sump_ref)
        sqp_ref[...] = jnp.zeros_like(sqp_ref)

    g1 = _project(wg_ref[...], g_ref[0]) * ag_ref[...] + bg_ref[...]
    x1 = _project(wx_ref[...], x_ref[0]) * ax_ref[...] + bx_ref[...]
    s = jnp.maximum(g1 + x1, 0.0)
    p = _project(wp_ref[...], s)             # (1, TM) pre-BN psi
    p_ref[0] = p
    sump_ref[...] += jnp.sum(p, axis=1, keepdims=True)
    sqp_ref[...] += jnp.sum(p * p, axis=1, keepdims=True)


# ----------------------- pass 3: psi BN + sigmoid + gate ---------------------
def _output_kernel(x_ref, p_ref, ap_ref, bp_ref, sc_ref, o_ref):
    x = x_ref[0]                                                   # (F_l, TM)
    psi = jax.nn.sigmoid(p_ref[0] * ap_ref[...] + bp_ref[...])     # (1, TM)
    o_ref[0] = x * (psi * sc_ref[...])


def _resize_bilinear_align_corners(g, out_hw):
    """F.interpolate(mode='bilinear', align_corners=True) in plain JAX."""
    N, C, H_in, W_in = g.shape
    H_out, W_out = out_hw
    if (H_in, W_in) == (H_out, W_out):
        return g

    def coords(n_in, n_out):
        if n_out == 1:
            return jnp.zeros((1,), jnp.float32)
        return jnp.arange(n_out, dtype=jnp.float32) * ((n_in - 1) / (n_out - 1))

    ys = coords(H_in, H_out)
    xs = coords(W_in, W_out)
    y0 = jnp.floor(ys).astype(jnp.int32)
    y1 = jnp.minimum(y0 + 1, H_in - 1)
    wy = (ys - y0.astype(jnp.float32))[None, None, :, None]
    x0 = jnp.floor(xs).astype(jnp.int32)
    x1 = jnp.minimum(x0 + 1, W_in - 1)
    wx = (xs - x0.astype(jnp.float32))[None, None, None, :]
    g_y = g[:, :, y0, :] * (1.0 - wy) + g[:, :, y1, :] * wy
    return g_y[:, :, :, x0] * (1.0 - wx) + g_y[:, :, :, x1] * wx


@jax.jit
def attention_block(g_nchw, x_nchw, params):
    """g: (N, F_g, Hg, Wg), x: (N, F_l, H, W) -> (N, F_l, H, W)."""
    N, F_l, H, W = x_nchw.shape
    # PyTorch: resize g to x's spatial size when they differ (align_corners=True).
    g_nchw = _resize_bilinear_align_corners(g_nchw, (H, W))
    F_g = g_nchw.shape[1]
    F_int = params["w_g"].shape[0]
    HW = H * W
    M = N * HW
    TM = _choose_tile(HW)
    grid = (N, HW // TM)

    g3 = g_nchw.reshape(N, F_g, HW)     # free reshapes (no transpose)
    x3 = x_nchw.reshape(N, F_l, HW)

    f32 = jnp.float32
    cparams_acc = pltpu.CompilerParams(
        dimension_semantics=("arbitrary", "arbitrary"),
        vmem_limit_bytes=48 * 1024 * 1024)
    cparams_par = pltpu.CompilerParams(
        dimension_semantics=("parallel", "parallel"),
        vmem_limit_bytes=48 * 1024 * 1024)

    g_spec = pl.BlockSpec((1, F_g, TM), lambda n, m: (n, 0, m))
    x_spec = pl.BlockSpec((1, F_l, TM), lambda n, m: (n, 0, m))
    wg_spec = pl.BlockSpec((F_int, F_g), lambda n, m: (0, 0))
    wx_spec = pl.BlockSpec((F_int, F_l), lambda n, m: (0, 0))
    wp_spec = pl.BlockSpec((1, F_int), lambda n, m: (0, 0))
    ch_spec = pl.BlockSpec((F_int, 1), lambda n, m: (0, 0))
    sc_spec = pl.BlockSpec((1, 1), lambda n, m: (0, 0))
    p_spec = pl.BlockSpec((1, 1, TM), lambda n, m: (n, 0, m))

    # ---- pass 1: per-channel sum / sumsq of g1 and x1 over all N*H*W ----
    stat = jax.ShapeDtypeStruct((F_int, 1), f32)
    sum_g, sq_g, sum_x, sq_x = pl.pallas_call(
        _stats_gx_kernel,
        out_shape=(stat, stat, stat, stat),
        grid=grid,
        in_specs=[g_spec, x_spec, wg_spec, wx_spec],
        out_specs=(ch_spec, ch_spec, ch_spec, ch_spec),
        compiler_params=cparams_acc,
    )(g3, x3, params["w_g"], params["w_x"])

    inv_m = 1.0 / M

    def _affine(s, sq, gamma, beta):
        # Fold train-mode BN into a per-channel affine: z * a + b.
        mean = s * inv_m
        var = jnp.maximum(sq * inv_m - mean * mean, 0.0)  # biased variance
        a = gamma * jax.lax.rsqrt(var + EPS)
        return a, beta - mean * a

    a_g, b_g = _affine(sum_g, sq_g, params["gamma_g"], params["beta_g"])
    a_x, b_x = _affine(sum_x, sq_x, params["gamma_x"], params["beta_x"])

    # ---- pass 2: pre-BN psi column + its global sum / sumsq ----
    p_pre, sum_p, sq_p = pl.pallas_call(
        _psi_pre_kernel,
        out_shape=(jax.ShapeDtypeStruct((N, 1, HW), f32),
                   jax.ShapeDtypeStruct((1, 1), f32),
                   jax.ShapeDtypeStruct((1, 1), f32)),
        grid=grid,
        in_specs=[g_spec, x_spec, wg_spec, wx_spec, wp_spec,
                  ch_spec, ch_spec, ch_spec, ch_spec],
        out_specs=(p_spec, sc_spec, sc_spec),
        compiler_params=cparams_acc,
    )(g3, x3, params["w_g"], params["w_x"], params["w_psi"],
      a_g, b_g, a_x, b_x)

    a_p, b_p = _affine(sum_p, sq_p, params["gamma_p"], params["beta_p"])
    scale = params["scale"].reshape(1, 1)

    # ---- pass 3: psi BN + sigmoid + gating (fully parallel grid) ----
    out3 = pl.pallas_call(
        _output_kernel,
        out_shape=jax.ShapeDtypeStruct((N, F_l, HW), f32),
        grid=grid,
        in_specs=[x_spec, p_spec, sc_spec, sc_spec, sc_spec],
        out_specs=x_spec,
        compiler_params=cparams_par,
    )(x3, p_pre, a_p, b_p, scale)

    return out3.reshape(N, F_l, H, W)


# -------------------------------- reference ---------------------------------
def _bn_ref(z, gamma, beta):
    # BatchNorm2d in training mode: biased variance over (N, H*W) per channel.
    mean = jnp.mean(z, axis=(0, 2), keepdims=True)
    var = jnp.mean((z - mean) ** 2, axis=(0, 2), keepdims=True)
    return gamma[None] * (z - mean) * jax.lax.rsqrt(var + EPS) + beta[None]


def reference(g_nchw, x_nchw, params):
    """Pure-JAX reference mirroring the PyTorch forward (train-mode BN)."""
    N, F_l, H, W = x_nchw.shape
    g_nchw = _resize_bilinear_align_corners(g_nchw, (H, W))
    F_g = g_nchw.shape[1]
    HW = H * W
    g3 = g_nchw.reshape(N, F_g, HW)
    x3 = x_nchw.reshape(N, F_l, HW)
    g1 = _bn_ref(jnp.einsum("oc,ncm->nom", params["w_g"], g3),
                 params["gamma_g"], params["beta_g"])
    x1 = _bn_ref(jnp.einsum("oc,ncm->nom", params["w_x"], x3),
                 params["gamma_x"], params["beta_x"])
    s = jnp.maximum(g1 + x1, 0.0)
    p = _bn_ref(jnp.einsum("oc,ncm->nom", params["w_psi"], s),
                params["gamma_p"], params["beta_p"])
    psi = jax.nn.sigmoid(p)
    out = x3 * (psi * params["scale"][0])
    return out.reshape(N, F_l, H, W)


def init_params(key, F_g, F_l, F_int):
    kg, kx, kp = jax.random.split(key, 3)
    # Conv2d(C_in, C_out, 1, bias=False) weights kept in the native PyTorch
    # (C_out, C_in) layout (trailing 1x1 dims dropped); BN affine params are
    # stored channels-first as (C, 1).
    return {
        "w_g": jax.random.normal(kg, (F_int, F_g), jnp.float32) * 0.1,
        "w_x": jax.random.normal(kx, (F_int, F_l), jnp.float32) * 0.1,
        "w_psi": jax.random.normal(kp, (1, F_int), jnp.float32) * 0.1,
        "gamma_g": jnp.ones((F_int, 1), jnp.float32),
        "beta_g": jnp.zeros((F_int, 1), jnp.float32),
        "gamma_x": jnp.ones((F_int, 1), jnp.float32),
        "beta_x": jnp.zeros((F_int, 1), jnp.float32),
        "gamma_p": jnp.ones((1, 1), jnp.float32),
        "beta_p": jnp.zeros((1, 1), jnp.float32),
        "scale": jnp.ones((1,), jnp.float32),   # nn.Parameter(torch.ones(1))
    }


if __name__ == "__main__":
    key = jax.random.PRNGKey(0)
    k_g, k_x, k_p = jax.random.split(key, 3)

    N, F_g, F_l, F_int, H, W = 2, 4, 4, 8, 16, 16
    g = jax.random.normal(k_g, (N, F_g, H, W), jnp.float32)
    x = jax.random.normal(k_x, (N, F_l, H, W), jnp.float32)
    params = init_params(k_p, F_g, F_l, F_int)

    out = jax.block_until_ready(attention_block(g, x, params))
    ref = jax.block_until_ready(reference(g, x, params))

    assert out.shape == (N, F_l, H, W)
    np.testing.assert_allclose(np.asarray(out), np.asarray(ref),
                               rtol=2e-2, atol=2e-2)
    print("KERNEL_OK")
</pallas_src>

<mosaic_0001>
module attributes {stable_mosaic.version = 11 : i64} {
  func.func @_output_kernel(%arg0: i32, %arg1: i32, %arg2: memref<1x4x256xf32, #tpu.memory_space<vmem>>, %arg3: memref<1x1x256xf32, #tpu.memory_space<vmem>>, %arg4: memref<1x1xf32, #tpu.memory_space<vmem>>, %arg5: memref<1x1xf32, #tpu.memory_space<vmem>>, %arg6: memref<1x1xf32, #tpu.memory_space<vmem>>, %arg7: memref<1x4x256xf32, #tpu.memory_space<vmem>>) attributes {dimension_semantics = [#tpu.dimension_semantics<parallel>, #tpu.dimension_semantics<parallel>], iteration_bounds = array<i64: 2, 1>, scalar_prefetch = 0 : i64, scratch_operands = 0 : i64, tpu.core_type = #tpu.core_type<tc>, window_params = [{transform_indices = @transform_0, window_bounds = array<i64: 1, 4, 256>}, {transform_indices = @transform_1, window_bounds = array<i64: 1, 1, 256>}, {pipeline_mode = #tpu.pipeline_mode<synchronous>, transform_indices = @transform_2, window_bounds = array<i64: 1, 1>}, {pipeline_mode = #tpu.pipeline_mode<synchronous>, transform_indices = @transform_3, window_bounds = array<i64: 1, 1>}, {pipeline_mode = #tpu.pipeline_mode<synchronous>, transform_indices = @transform_4, window_bounds = array<i64: 1, 1>}, {transform_indices = @transform_5, window_bounds = array<i64: 1, 4, 256>}]} {
    %c0 = arith.constant 0 : index
    %c0_0 = arith.constant 0 : index
    %c0_1 = arith.constant 0 : index
    %0 = vector.load %arg2[%c0, %c0_0, %c0_1] : memref<1x4x256xf32, #tpu.memory_space<vmem>>, vector<1x4x256xf32>
    %1 = vector.shape_cast %0 : vector<1x4x256xf32> to vector<4x256xf32>
    %c0_2 = arith.constant 0 : index
    %c0_3 = arith.constant 0 : index
    %c0_4 = arith.constant 0 : index
    %2 = vector.load %arg3[%c0_2, %c0_3, %c0_4] : memref<1x1x256xf32, #tpu.memory_space<vmem>>, vector<1x1x256xf32>
    %3 = vector.shape_cast %2 : vector<1x1x256xf32> to vector<1x256xf32>
    %c0_5 = arith.constant 0 : index
    %c0_6 = arith.constant 0 : index
    %4 = vector.load %arg4[%c0_5, %c0_6] : memref<1x1xf32, #tpu.memory_space<vmem>>, vector<1x1xf32>
    %5 = vector.broadcast %4 : vector<1x1xf32> to vector<1x256xf32>
    %6 = arith.mulf %3, %5 : vector<1x256xf32>
    %c0_7 = arith.constant 0 : index
    %c0_8 = arith.constant 0 : index
    %7 = vector.load %arg5[%c0_7, %c0_8] : memref<1x1xf32, #tpu.memory_space<vmem>>, vector<1x1xf32>
    %8 = vector.broadcast %7 : vector<1x1xf32> to vector<1x256xf32>
    %9 = arith.addf %6, %8 : vector<1x256xf32>
    %10 = arith.negf %9 : vector<1x256xf32>
    %11 = math.exp %10 : vector<1x256xf32>
    %cst = arith.constant 1.000000e+00 : f32
    %12 = vector.broadcast %cst : f32 to vector<1x256xf32>
    %13 = arith.addf %12, %11 : vector<1x256xf32>
    %14 = arith.divf %12, %13 : vector<1x256xf32>
    %c0_9 = arith.constant 0 : index
    %c0_10 = arith.constant 0 : index
    %15 = vector.load %arg6[%c0_9, %c0_10] : memref<1x1xf32, #tpu.memory_space<vmem>>, vector<1x1xf32>
    %16 = vector.broadcast %15 : vector<1x1xf32> to vector<1x256xf32>
    %17 = arith.mulf %14, %16 : vector<1x256xf32>
    %18 = vector.broadcast %17 : vector<1x256xf32> to vector<4x256xf32>
    %19 = arith.mulf %1, %18 : vector<4x256xf32>
    %c0_11 = arith.constant 0 : index
    %c0_12 = arith.constant 0 : index
    %c0_13 = arith.constant 0 : index
    %20 = vector.load %arg7[%c0_11, %c0_12, %c0_13] : memref<1x4x256xf32, #tpu.memory_space<vmem>>, vector<1x4x256xf32>
    %21 = vector.shape_cast %20 : vector<1x4x256xf32> to vector<4x256xf32>
    %22 = vector.shape_cast %19 : vector<4x256xf32> to vector<1x4x256xf32>
    tpu.vector_store %arg7[%c0_11, %c0_12, %c0_13], %22 {strides = array<i32>} : memref<1x4x256xf32, #tpu.memory_space<vmem>>, vector<1x4x256xf32>,
    return
  }
  func.func @transform_0(%arg0: i32, %arg1: i32) -> (i32, i32, i32) {
    %c0_i32 = arith.constant 0 : i32
    %c0_i32_0 = arith.constant 0 : i32
    return %arg0, %c0_i32, %arg1 : i32, i32, i32
  }
  func.func @transform_1(%arg0: i32, %arg1: i32) -> (i32, i32, i32) {
    %c0_i32 = arith.constant 0 : i32
    %c0_i32_0 = arith.constant 0 : i32
    return %arg0, %c0_i32, %arg1 : i32, i32, i32
  }
  func.func @transform_2(%arg0: i32, %arg1: i32) -> (i32, i32) {
    %c0_i32 = arith.constant 0 : i32
    %c0_i32_0 = arith.constant 0 : i32
    %c0_i32_1 = arith.constant 0 : i32
    return %c0_i32, %c0_i32_0 : i32, i32
  }
  func.func @transform_3(%arg0: i32, %arg1: i32) -> (i32, i32) {
    %c0_i32 = arith.constant 0 : i32
    %c0_i32_0 = arith.constant 0 : i32
    %c0_i32_1 = arith.constant 0 : i32
    return %c0_i32, %c0_i32_0 : i32, i32
  }
  func.func @transform_4(%arg0: i32, %arg1: i32) -> (i32, i32) {
    %c0_i32 = arith.constant 0 : i32
    %c0_i32_0 = arith.constant 0 : i32
    %c0_i32_1 = arith.constant 0 : i32
    return %c0_i32, %c0_i32_0 : i32, i32
  }
  func.func @transform_5(%arg0: i32, %arg1: i32) -> (i32, i32, i32) {
    %c0_i32 = arith.constant 0 : i32
    %c0_i32_0 = arith.constant 0 : i32
    return %arg0, %c0_i32, %arg1 : i32, i32, i32
  }
}

module attributes {stable_mosaic.version = 11 : i64} {
  func.func @_stats_gx_kernel(%arg0: i32, %arg1: i32, %arg2: memref<1x4x256xf32, #tpu.memory_space<vmem>>, %arg3: memref<1x4x256xf32, #tpu.memory_space<vmem>>, %arg4: memref<8x4xf32, #tpu.memory_space<vmem>>, %arg5: memref<8x4xf32, #tpu.memory_space<vmem>>, %arg6: memref<8x1xf32, #tpu.memory_space<vmem>>, %arg7: memref<8x1xf32, #tpu.memory_space<vmem>>, %arg8: memref<8x1xf32, #tpu.memory_space<vmem>>, %arg9: memref<8x1xf32, #tpu.memory_space<vmem>>) attributes {dimension_semantics = [#tpu.dimension_semantics<arbitrary>, #tpu.dimension_semantics<arbitrary>], iteration_bounds = array<i64: 2, 1>, scalar_prefetch = 0 : i64, scratch_operands = 0 : i64, tpu.core_type = #tpu.core_type<tc>, window_params = [{transform_indices = @transform_0, window_bounds = array<i64: 1, 4, 256>}, {transform_indices = @transform_1, window_bounds = array<i64: 1, 4, 256>}, {pipeline_mode = #tpu.pipeline_mode<synchronous>, transform_indices = @transform_2, window_bounds = array<i64: 8, 4>}, {pipeline_mode = #tpu.pipeline_mode<synchronous>, transform_indices = @transform_3, window_bounds = array<i64: 8, 4>}, {pipeline_mode = #tpu.pipeline_mode<synchronous>, transform_indices = @transform_4, window_bounds = array<i64: 8, 1>}, {pipeline_mode = #tpu.pipeline_mode<synchronous>, transform_indices = @transform_5, window_bounds = array<i64: 8, 1>}, {pipeline_mode = #tpu.pipeline_mode<synchronous>, transform_indices = @transform_6, window_bounds = array<i64: 8, 1>}, {pipeline_mode = #tpu.pipeline_mode<synchronous>, transform_indices = @transform_7, window_bounds = array<i64: 8, 1>}]} {
    %c0_i32 = arith.constant 0 : i32
    %0 = arith.cmpi eq, %arg0, %c0_i32 : i32
    %c0_i32_0 = arith.constant 0 : i32
    %1 = arith.cmpi eq, %arg1, %c0_i32_0 : i32
    %2 = arith.andi %0, %1 : i1
    %3 = arith.extui %2 : i1 to i32
    %c0_i32_1 = arith.constant 0 : i32
    %4 = arith.cmpi ne, %3, %c0_i32_1 : i32
    scf.if %4 {
      %cst_30 = arith.constant 0.000000e+00 : f32
      %79 = vector.broadcast %cst_30 : f32 to vector<8x1xf32>
      %c0_31 = arith.constant 0 : index
      %c0_32 = arith.constant 0 : index
      %80 = vector.load %arg6[%c0_31, %c0_32] : memref<8x1xf32, #tpu.memory_space<vmem>>, vector<8x1xf32>
      tpu.vector_store %arg6[%c0_31, %c0_32], %79 {strides = array<i32>} : memref<8x1xf32, #tpu.memory_space<vmem>>, vector<8x1xf32>,
      %cst_33 = arith.constant 0.000000e+00 : f32
      %81 = vector.broadcast %cst_33 : f32 to vector<8x1xf32>
      %c0_34 = arith.constant 0 : index
      %c0_35 = arith.constant 0 : index
      %82 = vector.load %arg7[%c0_34, %c0_35] : memref<8x1xf32, #tpu.memory_space<vmem>>, vector<8x1xf32>
      tpu.vector_store %arg7[%c0_34, %c0_35], %81 {strides = array<i32>} : memref<8x1xf32, #tpu.memory_space<vmem>>, vector<8x1xf32>,
      %cst_36 = arith.constant 0.000000e+00 : f32
      %83 = vector.broadcast %cst_36 : f32 to vector<8x1xf32>
      %c0_37 = arith.constant 0 : index
      %c0_38 = arith.constant 0 : index
      %84 = vector.load %arg8[%c0_37, %c0_38] : memref<8x1xf32, #tpu.memory_space<vmem>>, vector<8x1xf32>
      tpu.vector_store %arg8[%c0_37, %c0_38], %83 {strides = array<i32>} : memref<8x1xf32, #tpu.memory_space<vmem>>, vector<8x1xf32>,
      %cst_39 = arith.constant 0.000000e+00 : f32
      %85 = vector.broadcast %cst_39 : f32 to vector<8x1xf32>
      %c0_40 = arith.constant 0 : index
      %c0_41 = arith.constant 0 : index
      %86 = vector.load %arg9[%c0_40, %c0_41] : memref<8x1xf32, #tpu.memory_space<vmem>>, vector<8x1xf32>
      tpu.vector_store %arg9[%c0_40, %c0_41], %85 {strides = array<i32>} : memref<8x1xf32, #tpu.memory_space<vmem>>, vector<8x1xf32>,
    } else {
    }
    %c0 = arith.constant 0 : index
    %c0_2 = arith.constant 0 : index
    %5 = vector.load %arg4[%c0, %c0_2] : memref<8x4xf32, #tpu.memory_space<vmem>>, vector<8x4xf32>
    %c0_3 = arith.constant 0 : index
    %c0_4 = arith.constant 0 : index
    %c0_5 = arith.constant 0 : index
    %6 = vector.load %arg2[%c0_3, %c0_4, %c0_5] : memref<1x4x256xf32, #tpu.memory_space<vmem>>, vector<1x4x256xf32>
    %7 = vector.shape_cast %6 : vector<1x4x256xf32> to vector<4x256xf32>
    %8 = vector.extract_strided_slice %5 {offsets = [0, 0], sizes = [8, 1], strides = [1, 1]} : vector<8x4xf32> to vector<8x1xf32>
    %9 = vector.extract_strided_slice %7 {offsets = [0, 0], sizes = [1, 256], strides = [1, 1]} : vector<4x256xf32> to vector<1x256xf32>
    %10 = vector.broadcast %8 : vector<8x1xf32> to vector<8x256xf32>
    %11 = vector.broadcast %9 : vector<1x256xf32> to vector<8x256xf32>
    %12 = arith.mulf %10, %11 : vector<8x256xf32>
    %13 = vector.extract_strided_slice %5 {offsets = [0, 1], sizes = [8, 1], strides = [1, 1]} : vector<8x4xf32> to vector<8x1xf32>
    %14 = vector.extract_strided_slice %7 {offsets = [1, 0], sizes = [1, 256], strides = [1, 1]} : vector<4x256xf32> to vector<1x256xf32>
    %15 = vector.broadcast %13 : vector<8x1xf32> to vector<8x256xf32>
    %16 = vector.broadcast %14 : vector<1x256xf32> to vector<8x256xf32>
    %17 = arith.mulf %15, %16 : vector<8x256xf32>
    %18 = arith.addf %12, %17 : vector<8x256xf32>
    %19 = vector.extract_strided_slice %5 {offsets = [0, 2], sizes = [8, 1], strides = [1, 1]} : vector<8x4xf32> to vector<8x1xf32>
    %20 = vector.extract_strided_slice %7 {offsets = [2, 0], sizes = [1, 256], strides = [1, 1]} : vector<4x256xf32> to vector<1x256xf32>
    %21 = vector.broadcast %19 : vector<8x1xf32> to vector<8x256xf32>
    %22 = vector.broadcast %20 : vector<1x256xf32> to vector<8x256xf32>
    %23 = arith.mulf %21, %22 : vector<8x256xf32>
    %24 = arith.addf %18, %23 : vector<8x256xf32>
    %25 = vector.extract_strided_slice %5 {offsets = [0, 3], sizes = [8, 1], strides = [1, 1]} : vector<8x4xf32> to vector<8x1xf32>
    %26 = vector.extract_strided_slice %7 {offsets = [3, 0], sizes = [1, 256], strides = [1, 1]} : vector<4x256xf32> to vector<1x256xf32>
    %27 = vector.broadcast %25 : vector<8x1xf32> to vector<8x256xf32>
    %28 = vector.broadcast %26 : vector<1x256xf32> to vector<8x256xf32>
    %29 = arith.mulf %27, %28 : vector<8x256xf32>
    %30 = arith.addf %24, %29 : vector<8x256xf32>
    %c0_6 = arith.constant 0 : index
    %c0_7 = arith.constant 0 : index
    %31 = vector.load %arg5[%c0_6, %c0_7] : memref<8x4xf32, #tpu.memory_space<vmem>>, vector<8x4xf32>
    %c0_8 = arith.constant 0 : index
    %c0_9 = arith.constant 0 : index
    %c0_10 = arith.constant 0 : index
    %32 = vector.load %arg3[%c0_8, %c0_9, %c0_10] : memref<1x4x256xf32, #tpu.memory_space<vmem>>, vector<1x4x256xf32>
    %33 = vector.shape_cast %32 : vector<1x4x256xf32> to vector<4x256xf32>
    %34 = vector.extract_strided_slice %31 {offsets = [0, 0], sizes = [8, 1], strides = [1, 1]} : vector<8x4xf32> to vector<8x1xf32>
    %35 = vector.extract_strided_slice %33 {offsets = [0, 0], sizes = [1, 256], strides = [1, 1]} : vector<4x256xf32> to vector<1x256xf32>
    %36 = vector.broadcast %34 : vector<8x1xf32> to vector<8x256xf32>
    %37 = vector.broadcast %35 : vector<1x256xf32> to vector<8x256xf32>
    %38 = arith.mulf %36, %37 : vector<8x256xf32>
    %39 = vector.extract_strided_slice %31 {offsets = [0, 1], sizes = [8, 1], strides = [1, 1]} : vector<8x4xf32> to vector<8x1xf32>
    %40 = vector.extract_strided_slice %33 {offsets = [1, 0], sizes = [1, 256], strides = [1, 1]} : vector<4x256xf32> to vector<1x256xf32>
    %41 = vector.broadcast %39 : vector<8x1xf32> to vector<8x256xf32>
    %42 = vector.broadcast %40 : vector<1x256xf32> to vector<8x256xf32>
    %43 = arith.mulf %41, %42 : vector<8x256xf32>
    %44 = arith.addf %38, %43 : vector<8x256xf32>
    %45 = vector.extract_strided_slice %31 {offsets = [0, 2], sizes = [8, 1], strides = [1, 1]} : vector<8x4xf32> to vector<8x1xf32>
    %46 = vector.extract_strided_slice %33 {offsets = [2, 0], sizes = [1, 256], strides = [1, 1]} : vector<4x256xf32> to vector<1x256xf32>
    %47 = vector.broadcast %45 : vector<8x1xf32> to vector<8x256xf32>
    %48 = vector.broadcast %46 : vector<1x256xf32> to vector<8x256xf32>
    %49 = arith.mulf %47, %48 : vector<8x256xf32>
    %50 = arith.addf %44, %49 : vector<8x256xf32>
    %51 = vector.extract_strided_slice %31 {offsets = [0, 3], sizes = [8, 1], strides = [1, 1]} : vector<8x4xf32> to vector<8x1xf32>
    %52 = vector.extract_strided_slice %33 {offsets = [3, 0], sizes = [1, 256], strides = [1, 1]} : vector<4x256xf32> to vector<1x256xf32>
    %53 = vector.broadcast %51 : vector<8x1xf32> to vector<8x256xf32>
    %54 = vector.broadcast %52 : vector<1x256xf32> to vector<8x256xf32>
    %55 = arith.mulf %53, %54 : vector<8x256xf32>
    %56 = arith.addf %50, %55 : vector<8x256xf32>
    %c0_11 = arith.constant 0 : index
    %c0_12 = arith.constant 0 : index
    %57 = vector.load %arg6[%c0_11, %c0_12] : memref<8x1xf32, #tpu.memory_space<vmem>>, vector<8x1xf32>
    %cst = arith.constant dense<0.000000e+00> : vector<8xf32>
    %58 = vector.multi_reduction <add>, %30, %cst [1] : vector<8x256xf32> to vector<8xf32>
    %59 = vector.shape_cast %58 : vector<8xf32> to vector<8x1xf32>
    %60 = arith.addf %57, %59 : vector<8x1xf32>
    %c0_13 = arith.constant 0 : index
    %c0_14 = arith.constant 0 : index
    %61 = vector.load %arg6[%c0_13, %c0_14] : memref<8x1xf32, #tpu.memory_space<vmem>>, vector<8x1xf32>
    tpu.vector_store %arg6[%c0_13, %c0_14], %60 {strides = array<i32>} : memref<8x1xf32, #tpu.memory_space<vmem>>, vector<8x1xf32>,
    %c0_15 = arith.constant 0 : index
    %c0_16 = arith.constant 0 : index
    %62 = vector.load %arg7[%c0_15, %c0_16] : memref<8x1xf32, #tpu.memory_space<vmem>>, vector<8x1xf32>
    %63 = arith.mulf %30, %30 : vector<8x256xf32>
    %cst_17 = arith.constant dense<0.000000e+00> : vector<8xf32>
    %64 = vector.multi_reduction <add>, %63, %cst_17 [1] : vector<8x256xf32> to vector<8xf32>
    %65 = vector.shape_cast %64 : vector<8xf32> to vector<8x1xf32>
    %66 = arith.addf %62, %65 : vector<8x1xf32>
    %c0_18 = arith.constant 0 : index
    %c0_19 = arith.constant 0 : index
    %67 = vector.load %arg7[%c0_18, %c0_19] : memref<8x1xf32, #tpu.memory_space<vmem>>, vector<8x1xf32>
    tpu.vector_store %arg7[%c0_18, %c0_19], %66 {strides = array<i32>} : memref<8x1xf32, #tpu.memory_space<vmem>>, vector<8x1xf32>,
    %c0_20 = arith.constant 0 : index
    %c0_21 = arith.constant 0 : index
    %68 = vector.load %arg8[%c0_20, %c0_21] : memref<8x1xf32, #tpu.memory_space<vmem>>, vector<8x1xf32>
    %cst_22 = arith.constant dense<0.000000e+00> : vector<8xf32>
    %69 = vector.multi_reduction <add>, %56, %cst_22 [1] : vector<8x256xf32> to vector<8xf32>
    %70 = vector.shape_cast %69 : vector<8xf32> to vector<8x1xf32>
    %71 = arith.addf %68, %70 : vector<8x1xf32>
    %c0_23 = arith.constant 0 : index
    %c0_24 = arith.constant 0 : index
    %72 = vector.load %arg8[%c0_23, %c0_24] : memref<8x1xf32, #tpu.memory_space<vmem>>, vector<8x1xf32>
    tpu.vector_store %arg8[%c0_23, %c0_24], %71 {strides = array<i32>} : memref<8x1xf32, #tpu.memory_space<vmem>>, vector<8x1xf32>,
    %c0_25 = arith.constant 0 : index
    %c0_26 = arith.constant 0 : index
    %73 = vector.load %arg9[%c0_25, %c0_26] : memref<8x1xf32, #tpu.memory_space<vmem>>, vector<8x1xf32>
    %74 = arith.mulf %56, %56 : vector<8x256xf32>
    %cst_27 = arith.constant dense<0.000000e+00> : vector<8xf32>
    %75 = vector.multi_reduction <add>, %74, %cst_27 [1] : vector<8x256xf32> to vector<8xf32>
    %76 = vector.shape_cast %75 : vector<8xf32> to vector<8x1xf32>
    %77 = arith.addf %73, %76 : vector<8x1xf32>
    %c0_28 = arith.constant 0 : index
    %c0_29 = arith.constant 0 : index
    %78 = vector.load %arg9[%c0_28, %c0_29] : memref<8x1xf32, #tpu.memory_space<vmem>>, vector<8x1xf32>
    tpu.vector_store %arg9[%c0_28, %c0_29], %77 {strides = array<i32>} : memref<8x1xf32, #tpu.memory_space<vmem>>, vector<8x1xf32>,
    return
  }
  func.func @transform_0(%arg0: i32, %arg1: i32) -> (i32, i32, i32) {
    %c0_i32 = arith.constant 0 : i32
    %c0_i32_0 = arith.constant 0 : i32
    return %arg0, %c0_i32, %arg1 : i32, i32, i32
  }
  func.func @transform_1(%arg0: i32, %arg1: i32) -> (i32, i32, i32) {
    %c0_i32 = arith.constant 0 : i32
    %c0_i32_0 = arith.constant 0 : i32
    return %arg0, %c0_i32, %arg1 : i32, i32, i32
  }
  func.func @transform_2(%arg0: i32, %arg1: i32) -> (i32, i32) {
    %c0_i32 = arith.constant 0 : i32
    %c0_i32_0 = arith.constant 0 : i32
    %c0_i32_1 = arith.constant 0 : i32
    return %c0_i32, %c0_i32_0 : i32, i32
  }
  func.func @transform_3(%arg0: i32, %arg1: i32) -> (i32, i32) {
    %c0_i32 = arith.constant 0 : i32
    %c0_i32_0 = arith.constant 0 : i32
    %c0_i32_1 = arith.constant 0 : i32
    return %c0_i32, %c0_i32_0 : i32, i32
  }
  func.func @transform_4(%arg0: i32, %arg1: i32) -> (i32, i32) {
    %c0_i32 = arith.constant 0 : i32
    %c0_i32_0 = arith.constant 0 : i32
    %c0_i32_1 = arith.constant 0 : i32
    return %c0_i32, %c0_i32_0 : i32, i32
  }
  func.func @transform_5(%arg0: i32, %arg1: i32) -> (i32, i32) {
    %c0_i32 = arith.constant 0 : i32
    %c0_i32_0 = arith.constant 0 : i32
    %c0_i32_1 = arith.constant 0 : i32
    return %c0_i32, %c0_i32_0 : i32, i32
  }
  func.func @transform_6(%arg0: i32, %arg1: i32) -> (i32, i32) {
    %c0_i32 = arith.constant 0 : i32
    %c0_i32_0 = arith.constant 0 : i32
    %c0_i32_1 = arith.constant 0 : i32
    return %c0_i32, %c0_i32_0 : i32, i32
  }
  func.func @transform_7(%arg0: i32, %arg1: i32) -> (i32, i32) {
    %c0_i32 = arith.constant 0 : i32
    %c0_i32_0 = arith.constant 0 : i32
    %c0_i32_1 = arith.constant 0 : i32
    return %c0_i32, %c0_i32_0 : i32, i32
  }
}

module attributes {stable_mosaic.version = 11 : i64} {
  func.func @_psi_pre_kernel(%arg0: i32, %arg1: i32, %arg2: memref<1x4x256xf32, #tpu.memory_space<vmem>>, %arg3: memref<1x4x256xf32, #tpu.memory_space<vmem>>, %arg4: memref<8x4xf32, #tpu.memory_space<vmem>>, %arg5: memref<8x4xf32, #tpu.memory_space<vmem>>, %arg6: memref<1x8xf32, #tpu.memory_space<vmem>>, %arg7: memref<8x1xf32, #tpu.memory_space<vmem>>, %arg8: memref<8x1xf32, #tpu.memory_space<vmem>>, %arg9: memref<8x1xf32, #tpu.memory_space<vmem>>, %arg10: memref<8x1xf32, #tpu.memory_space<vmem>>, %arg11: memref<1x1x256xf32, #tpu.memory_space<vmem>>, %arg12: memref<1x1xf32, #tpu.memory_space<vmem>>, %arg13: memref<1x1xf32, #tpu.memory_space<vmem>>) attributes {dimension_semantics = [#tpu.dimension_semantics<arbitrary>, #tpu.dimension_semantics<arbitrary>], iteration_bounds = array<i64: 2, 1>, scalar_prefetch = 0 : i64, scratch_operands = 0 : i64, tpu.core_type = #tpu.core_type<tc>, window_params = [{transform_indices = @transform_0, window_bounds = array<i64: 1, 4, 256>}, {transform_indices = @transform_1, window_bounds = array<i64: 1, 4, 256>}, {pipeline_mode = #tpu.pipeline_mode<synchronous>, transform_indices = @transform_2, window_bounds = array<i64: 8, 4>}, {pipeline_mode = #tpu.pipeline_mode<synchronous>, transform_indices = @transform_3, window_bounds = array<i64: 8, 4>}, {pipeline_mode = #tpu.pipeline_mode<synchronous>, transform_indices = @transform_4, window_bounds = array<i64: 1, 8>}, {pipeline_mode = #tpu.pipeline_mode<synchronous>, transform_indices = @transform_5, window_bounds = array<i64: 8, 1>}, {pipeline_mode = #tpu.pipeline_mode<synchronous>, transform_indices = @transform_6, window_bounds = array<i64: 8, 1>}, {pipeline_mode = #tpu.pipeline_mode<synchronous>, transform_indices = @transform_7, window_bounds = array<i64: 8, 1>}, {pipeline_mode = #tpu.pipeline_mode<synchronous>, transform_indices = @transform_8, window_bounds = array<i64: 8, 1>}, {transform_indices = @transform_9, window_bounds = array<i64: 1, 1, 256>}, {pipeline_mode = #tpu.pipeline_mode<synchronous>, transform_indices = @transform_10, window_bounds = array<i64: 1, 1>}, {pipeline_mode = #tpu.pipeline_mode<synchronous>, transform_indices = @transform_11, window_bounds = array<i64: 1, 1>}]} {
    %c0_i32 = arith.constant 0 : i32
    %0 = arith.cmpi eq, %arg0, %c0_i32 : i32
    %c0_i32_0 = arith.constant 0 : i32
    %1 = arith.cmpi eq, %arg1, %c0_i32_0 : i32
    %2 = arith.andi %0, %1 : i1
    %3 = arith.extui %2 : i1 to i32
    %c0_i32_1 = arith.constant 0 : i32
    %4 = arith.cmpi ne, %3, %c0_i32_1 : i32
    scf.if %4 {
      %cst_34 = arith.constant 0.000000e+00 : f32
      %126 = vector.broadcast %cst_34 : f32 to vector<1x1xf32>
      %c0_35 = arith.constant 0 : index
      %c0_36 = arith.constant 0 : index
      %127 = vector.load %arg12[%c0_35, %c0_36] : memref<1x1xf32, #tpu.memory_space<vmem>>, vector<1x1xf32>
      tpu.vector_store %arg12[%c0_35, %c0_36], %126 {strides = array<i32>} : memref<1x1xf32, #tpu.memory_space<vmem>>, vector<1x1xf32>,
      %cst_37 = arith.constant 0.000000e+00 : f32
      %128 = vector.broadcast %cst_37 : f32 to vector<1x1xf32>
      %c0_38 = arith.constant 0 : index
      %c0_39 = arith.constant 0 : index
      %129 = vector.load %arg13[%c0_38, %c0_39] : memref<1x1xf32, #tpu.memory_space<vmem>>, vector<1x1xf32>
      tpu.vector_store %arg13[%c0_38, %c0_39], %128 {strides = array<i32>} : memref<1x1xf32, #tpu.memory_space<vmem>>, vector<1x1xf32>,
    } else {
    }
    %c0 = arith.constant 0 : index
    %c0_2 = arith.constant 0 : index
    %5 = vector.load %arg4[%c0, %c0_2] : memref<8x4xf32, #tpu.memory_space<vmem>>, vector<8x4xf32>
    %c0_3 = arith.constant 0 : index
    %c0_4 = arith.constant 0 : index
    %c0_5 = arith.constant 0 : index
    %6 = vector.load %arg2[%c0_3, %c0_4, %c0_5] : memref<1x4x256xf32, #tpu.memory_space<vmem>>, vector<1x4x256xf32>
    %7 = vector.shape_cast %6 : vector<1x4x256xf32> to vector<4x256xf32>
    %8 = vector.extract_strided_slice %5 {offsets = [0, 0], sizes = [8, 1], strides = [1, 1]} : vector<8x4xf32> to vector<8x1xf32>
    %9 = vector.extract_strided_slice %7 {offsets = [0, 0], sizes = [1, 256], strides = [1, 1]} : vector<4x256xf32> to vector<1x256xf32>
    %10 = vector.broadcast %8 : vector<8x1xf32> to vector<8x256xf32>
    %11 = vector.broadcast %9 : vector<1x256xf32> to vector<8x256xf32>
    %12 = arith.mulf %10, %11 : vector<8x256xf32>
    %13 = vector.extract_strided_slice %5 {offsets = [0, 1], sizes = [8, 1], strides = [1, 1]} : vector<8x4xf32> to vector<8x1xf32>
    %14 = vector.extract_strided_slice %7 {offsets = [1, 0], sizes = [1, 256], strides = [1, 1]} : vector<4x256xf32> to vector<1x256xf32>
    %15 = vector.broadcast %13 : vector<8x1xf32> to vector<8x256xf32>
    %16 = vector.broadcast %14 : vector<1x256xf32> to vector<8x256xf32>
    %17 = arith.mulf %15, %16 : vector<8x256xf32>
    %18 = arith.addf %12, %17 : vector<8x256xf32>
    %19 = vector.extract_strided_slice %5 {offsets = [0, 2], sizes = [8, 1], strides = [1, 1]} : vector<8x4xf32> to vector<8x1xf32>
    %20 = vector.extract_strided_slice %7 {offsets = [2, 0], sizes = [1, 256], strides = [1, 1]} : vector<4x256xf32> to vector<1x256xf32>
    %21 = vector.broadcast %19 : vector<8x1xf32> to vector<8x256xf32>
    %22 = vector.broadcast %20 : vector<1x256xf32> to vector<8x256xf32>
    %23 = arith.mulf %21, %22 : vector<8x256xf32>
    %24 = arith.addf %18, %23 : vector<8x256xf32>
    %25 = vector.extract_strided_slice %5 {offsets = [0, 3], sizes = [8, 1], strides = [1, 1]} : vector<8x4xf32> to vector<8x1xf32>
    %26 = vector.extract_strided_slice %7 {offsets = [3, 0], sizes = [1, 256], strides = [1, 1]} : vector<4x256xf32> to vector<1x256xf32>
    %27 = vector.broadcast %25 : vector<8x1xf32> to vector<8x256xf32>
    %28 = vector.broadcast %26 : vector<1x256xf32> to vector<8x256xf32>
    %29 = arith.mulf %27, %28 : vector<8x256xf32>
    %30 = arith.addf %24, %29 : vector<8x256xf32>
    %c0_6 = arith.constant 0 : index
    %c0_7 = arith.constant 0 : index
    %31 = vector.load %arg7[%c0_6, %c0_7] : memref<8x1xf32, #tpu.memory_space<vmem>>, vector<8x1xf32>
    %32 = vector.broadcast %31 : vector<8x1xf32> to vector<8x256xf32>
    %33 = arith.mulf %30, %32 : vector<8x256xf32>
    %c0_8 = arith.constant 0 : index
    %c0_9 = arith.constant 0 : index
    %34 = vector.load %arg8[%c0_8, %c0_9] : memref<8x1xf32, #tpu.memory_space<vmem>>, vector<8x1xf32>
    %35 = vector.broadcast %34 : vector<8x1xf32> to vector<8x256xf32>
    %36 = arith.addf %33, %35 : vector<8x256xf32>
    %c0_10 = arith.constant 0 : index
    %c0_11 = arith.constant 0 : index
    %37 = vector.load %arg5[%c0_10, %c0_11] : memref<8x4xf32, #tpu.memory_space<vmem>>, vector<8x4xf32>
    %c0_12 = arith.constant 0 : index
    %c0_13 = arith.constant 0 : index
    %c0_14 = arith.constant 0 : index
    %38 = vector.load %arg3[%c0_12, %c0_13, %c0_14] : memref<1x4x256xf32, #tpu.memory_space<vmem>>, vector<1x4x256xf32>
    %39 = vector.shape_cast %38 : vector<1x4x256xf32> to vector<4x256xf32>
    %40 = vector.extract_strided_slice %37 {offsets = [0, 0], sizes = [8, 1], strides = [1, 1]} : vector<8x4xf32> to vector<8x1xf32>
    %41 = vector.extract_strided_slice %39 {offsets = [0, 0], sizes = [1, 256], strides = [1, 1]} : vector<4x256xf32> to vector<1x256xf32>
    %42 = vector.broadcast %40 : vector<8x1xf32> to vector<8x256xf32>
    %43 = vector.broadcast %41 : vector<1x256xf32> to vector<8x256xf32>
    %44 = arith.mulf %42, %43 : vector<8x256xf32>
    %45 = vector.extract_strided_slice %37 {offsets = [0, 1], sizes = [8, 1], strides = [1, 1]} : vector<8x4xf32> to vector<8x1xf32>
    %46 = vector.extract_strided_slice %39 {offsets = [1, 0], sizes = [1, 256], strides = [1, 1]} : vector<4x256xf32> to vector<1x256xf32>
    %47 = vector.broadcast %45 : vector<8x1xf32> to vector<8x256xf32>
    %48 = vector.broadcast %46 : vector<1x256xf32> to vector<8x256xf32>
    %49 = arith.mulf %47, %48 : vector<8x256xf32>
    %50 = arith.addf %44, %49 : vector<8x256xf32>
    %51 = vector.extract_strided_slice %37 {offsets = [0, 2], sizes = [8, 1], strides = [1, 1]} : vector<8x4xf32> to vector<8x1xf32>
    %52 = vector.extract_strided_slice %39 {offsets = [2, 0], sizes = [1, 256], strides = [1, 1]} : vector<4x256xf32> to vector<1x256xf32>
    %53 = vector.broadcast %51 : vector<8x1xf32> to vector<8x256xf32>
    %54 = vector.broadcast %52 : vector<1x256xf32> to vector<8x256xf32>
    %55 = arith.mulf %53, %54 : vector<8x256xf32>
    %56 = arith.addf %50, %55 : vector<8x256xf32>
    %57 = vector.extract_strided_slice %37 {offsets = [0, 3], sizes = [8, 1], strides = [1, 1]} : vector<8x4xf32> to vector<8x1xf32>
    %58 = vector.extract_strided_slice %39 {offsets = [3, 0], sizes = [1, 256], strides = [1, 1]} : vector<4x256xf32> to vector<1x256xf32>
    %59 = vector.broadcast %57 : vector<8x1xf32> to vector<8x256xf32>
    %60 = vector.broadcast %58 : vector<1x256xf32> to vector<8x256xf32>
    %61 = arith.mulf %59, %60 : vector<8x256xf32>
    %62 = arith.addf %56, %61 : vector<8x256xf32>
    %c0_15 = arith.constant 0 : index
    %c0_16 = arith.constant 0 : index
    %63 = vector.load %arg9[%c0_15, %c0_16] : memref<8x1xf32, #tpu.memory_space<vmem>>, vector<8x1xf32>
    %64 = vector.broadcast %63 : vector<8x1xf32> to vector<8x256xf32>
    %65 = arith.mulf %62, %64 : vector<8x256xf32>
    %c0_17 = arith.constant 0 : index
    %c0_18 = arith.constant 0 : index
    %66 = vector.load %arg10[%c0_17, %c0_18] : memref<8x1xf32, #tpu.memory_space<vmem>>, vector<8x1xf32>
    %67 = vector.broadcast %66 : vector<8x1xf32> to vector<8x256xf32>
    %68 = arith.addf %65, %67 : vector<8x256xf32>
    %69 = arith.addf %36, %68 : vector<8x256xf32>
    %cst = arith.constant 0.000000e+00 : f32
    %70 = vector.broadcast %cst : f32 to vector<8x256xf32>
    %71 = arith.maximumf %69, %70 : vector<8x256xf32>
    %c0_19 = arith.constant 0 : index
    %c0_20 = arith.constant 0 : index
    %72 = vector.load %arg6[%c0_19, %c0_20] : memref<1x8xf32, #tpu.memory_space<vmem>>, vector<1x8xf32>
    %73 = vector.extract_strided_slice %72 {offsets = [0, 0], sizes = [1, 1], strides = [1, 1]} : vector<1x8xf32> to vector<1x1xf32>
    %74 = vector.extract_strided_slice %71 {offsets = [0, 0], sizes = [1, 256], strides = [1, 1]} : vector<8x256xf32> to vector<1x256xf32>
    %75 = vector.broadcast %73 : vector<1x1xf32> to vector<1x256xf32>
    %76 = arith.mulf %75, %74 : vector<1x256xf32>
    %77 = vector.extract_strided_slice %72 {offsets = [0, 1], sizes = [1, 1], strides = [1, 1]} : vector<1x8xf32> to vector<1x1xf32>
    %78 = vector.extract_strided_slice %71 {offsets = [1, 0], sizes = [1, 256], strides = [1, 1]} : vector<8x256xf32> to vector<1x256xf32>
    %79 = vector.broadcast %77 : vector<1x1xf32> to vector<1x256xf32>
    %80 = arith.mulf %79, %78 : vector<1x256xf32>
    %81 = arith.addf %76, %80 : vector<1x256xf32>
    %82 = vector.extract_strided_slice %72 {offsets = [0, 2], sizes = [1, 1], strides = [1, 1]} : vector<1x8xf32> to vector<1x1xf32>
    %83 = vector.extract_strided_slice %71 {offsets = [2, 0], sizes = [1, 256], strides = [1, 1]} : vector<8x256xf32> to vector<1x256xf32>
    %84 = vector.broadcast %82 : vector<1x1xf32> to vector<1x256xf32>
    %85 = arith.mulf %84, %83 : vector<1x256xf32>
    %86 = arith.addf %81, %85 : vector<1x256xf32>
    %87 = vector.extract_strided_slice %72 {offsets = [0, 3], sizes = [1, 1], strides = [1, 1]} : vector<1x8xf32> to vector<1x1xf32>
    %88 = vector.extract_strided_slice %71 {offsets = [3, 0], sizes = [1, 256], strides = [1, 1]} : vector<8x256xf32> to vector<1x256xf32>
    %89 = vector.broadcast %87 : vector<1x1xf32> to vector<1x256xf32>
    %90 = arith.mulf %89, %88 : vector<1x256xf32>
    %91 = arith.addf %86, %90 : vector<1x256xf32>
    %92 = vector.extract_strided_slice %72 {offsets = [0, 4], sizes = [1, 1], strides = [1, 1]} : vector<1x8xf32> to vector<1x1xf32>
    %93 = vector.extract_strided_slice %71 {offsets = [4, 0], sizes = [1, 256], strides = [1, 1]} : vector<8x256xf32> to vector<1x256xf32>
    %94 = vector.broadcast %92 : vector<1x1xf32> to vector<1x256xf32>
    %95 = arith.mulf %94, %93 : vector<1x256xf32>
    %96 = arith.addf %91, %95 : vector<1x256xf32>
    %97 = vector.extract_strided_slice %72 {offsets = [0, 5], sizes = [1, 1], strides = [1, 1]} : vector<1x8xf32> to vector<1x1xf32>
    %98 = vector.extract_strided_slice %71 {offsets = [5, 0], sizes = [1, 256], strides = [1, 1]} : vector<8x256xf32> to vector<1x256xf32>
    %99 = vector.broadcast %97 : vector<1x1xf32> to vector<1x256xf32>
    %100 = arith.mulf %99, %98 : vector<1x256xf32>
    %101 = arith.addf %96, %100 : vector<1x256xf32>
    %102 = vector.extract_strided_slice %72 {offsets = [0, 6], sizes = [1, 1], strides = [1, 1]} : vector<1x8xf32> to vector<1x1xf32>
    %103 = vector.extract_strided_slice %71 {offsets = [6, 0], sizes = [1, 256], strides = [1, 1]} : vector<8x256xf32> to vector<1x256xf32>
    %104 = vector.broadcast %102 : vector<1x1xf32> to vector<1x256xf32>
    %105 = arith.mulf %104, %103 : vector<1x256xf32>
    %106 = arith.addf %101, %105 : vector<1x256xf32>
    %107 = vector.extract_strided_slice %72 {offsets = [0, 7], sizes = [1, 1], strides = [1, 1]} : vector<1x8xf32> to vector<1x1xf32>
    %108 = vector.extract_strided_slice %71 {offsets = [7, 0], sizes = [1, 256], strides = [1, 1]} : vector<8x256xf32> to vector<1x256xf32>
    %109 = vector.broadcast %107 : vector<1x1xf32> to vector<1x256xf32>
    %110 = arith.mulf %109, %108 : vector<1x256xf32>
    %111 = arith.addf %106, %110 : vector<1x256xf32>
    %c0_21 = arith.constant 0 : index
    %c0_22 = arith.constant 0 : index
    %c0_23 = arith.constant 0 : index
    %112 = vector.load %arg11[%c0_21, %c0_22, %c0_23] : memref<1x1x256xf32, #tpu.memory_space<vmem>>, vector<1x1x256xf32>
    %113 = vector.shape_cast %112 : vector<1x1x256xf32> to vector<1x256xf32>
    %114 = vector.shape_cast %111 : vector<1x256xf32> to vector<1x1x256xf32>
    tpu.vector_store %arg11[%c0_21, %c0_22, %c0_23], %114 {strides = array<i32>} : memref<1x1x256xf32, #tpu.memory_space<vmem>>, vector<1x1x256xf32>,
    %c0_24 = arith.constant 0 : index
    %c0_25 = arith.constant 0 : index
    %115 = vector.load %arg12[%c0_24, %c0_25] : memref<1x1xf32, #tpu.memory_space<vmem>>, vector<1x1xf32>
    %cst_26 = arith.constant dense<0.000000e+00> : vector<1xf32>
    %116 = vector.multi_reduction <add>, %111, %cst_26 [1] : vector<1x256xf32> to vector<1xf32>
    %117 = vector.shape_cast %116 : vector<1xf32> to vector<1x1xf32>
    %118 = arith.addf %115, %117 : vector<1x1xf32>
    %c0_27 = arith.constant 0 : index
    %c0_28 = arith.constant 0 : index
    %119 = vector.load %arg12[%c0_27, %c0_28] : memref<1x1xf32, #tpu.memory_space<vmem>>, vector<1x1xf32>
    tpu.vector_store %arg12[%c0_27, %c0_28], %118 {strides = array<i32>} : memref<1x1xf32, #tpu.memory_space<vmem>>, vector<1x1xf32>,
    %c0_29 = arith.constant 0 : index
    %c0_30 = arith.constant 0 : index
    %120 = vector.load %arg13[%c0_29, %c0_30] : memref<1x1xf32, #tpu.memory_space<vmem>>, vector<1x1xf32>
    %121 = arith.mulf %111, %111 : vector<1x256xf32>
    %cst_31 = arith.constant dense<0.000000e+00> : vector<1xf32>
    %122 = vector.multi_reduction <add>, %121, %cst_31 [1] : vector<1x256xf32> to vector<1xf32>
    %123 = vector.shape_cast %122 : vector<1xf32> to vector<1x1xf32>
    %124 = arith.addf %120, %123 : vector<1x1xf32>
    %c0_32 = arith.constant 0 : index
    %c0_33 = arith.constant 0 : index
    %125 = vector.load %arg13[%c0_32, %c0_33] : memref<1x1xf32, #tpu.memory_space<vmem>>, vector<1x1xf32>
    tpu.vector_store %arg13[%c0_32, %c0_33], %124 {strides = array<i32>} : memref<1x1xf32, #tpu.memory_space<vmem>>, vector<1x1xf32>,
    return
  }
  func.func @transform_0(%arg0: i32, %arg1: i32) -> (i32, i32, i32) {
    %c0_i32 = arith.constant 0 : i32
    %c0_i32_0 = arith.constant 0 : i32
    return %arg0, %c0_i32, %arg1 : i32, i32, i32
  }
  func.func @transform_1(%arg0: i32, %arg1: i32) -> (i32, i32, i32) {
    %c0_i32 = arith.constant 0 : i32
    %c0_i32_0 = arith.constant 0 : i32
    return %arg0, %c0_i32, %arg1 : i32, i32, i32
  }
  func.func @transform_2(%arg0: i32, %arg1: i32) -> (i32, i32) {
    %c0_i32 = arith.constant 0 : i32
    %c0_i32_0 = arith.constant 0 : i32
    %c0_i32_1 = arith.constant 0 : i32
    return %c0_i32, %c0_i32_0 : i32, i32
  }
  func.func @transform_3(%arg0: i32, %arg1: i32) -> (i32, i32) {
    %c0_i32 = arith.constant 0 : i32
    %c0_i32_0 = arith.constant 0 : i32
    %c0_i32_1 = arith.constant 0 : i32
    return %c0_i32, %c0_i32_0 : i32, i32
  }
  func.func @transform_4(%arg0: i32, %arg1: i32) -> (i32, i32) {
    %c0_i32 = arith.constant 0 : i32
    %c0_i32_0 = arith.constant 0 : i32
    %c0_i32_1 = arith.constant 0 : i32
    return %c0_i32, %c0_i32_0 : i32, i32
  }
  func.func @transform_5(%arg0: i32, %arg1: i32) -> (i32, i32) {
    %c0_i32 = arith.constant 0 : i32
    %c0_i32_0 = arith.constant 0 : i32
    %c0_i32_1 = arith.constant 0 : i32
    return %c0_i32, %c0_i32_0 : i32, i32
  }
  func.func @transform_6(%arg0: i32, %arg1: i32) -> (i32, i32) {
    %c0_i32 = arith.constant 0 : i32
    %c0_i32_0 = arith.constant 0 : i32
    %c0_i32_1 = arith.constant 0 : i32
    return %c0_i32, %c0_i32_0 : i32, i32
  }
  func.func @transform_7(%arg0: i32, %arg1: i32) -> (i32, i32) {
    %c0_i32 = arith.constant 0 : i32
    %c0_i32_0 = arith.constant 0 : i32
    %c0_i32_1 = arith.constant 0 : i32
    return %c0_i32, %c0_i32_0 : i32, i32
  }
  func.func @transform_8(%arg0: i32, %arg1: i32) -> (i32, i32) {
    %c0_i32 = arith.constant 0 : i32
    %c0_i32_0 = arith.constant 0 : i32
    %c0_i32_1 = arith.constant 0 : i32
    return %c0_i32, %c0_i32_0 : i32, i32
  }
  func.func @transform_9(%arg0: i32, %arg1: i32) -> (i32, i32, i32) {
    %c0_i32 = arith.constant 0 : i32
    %c0_i32_0 = arith.constant 0 : i32
    return %arg0, %c0_i32, %arg1 : i32, i32, i32
  }
  func.func @transform_10(%arg0: i32, %arg1: i32) -> (i32, i32) {
    %c0_i32 = arith.constant 0 : i32
    %c0_i32_0 = arith.constant 0 : i32
    %c0_i32_1 = arith.constant 0 : i32
    return %c0_i32, %c0_i32_0 : i32, i32
  }
  func.func @transform_11(%arg0: i32, %arg1: i32) -> (i32, i32) {
    %c0_i32 = arith.constant 0 : i32
    %c0_i32_0 = arith.constant 0 : i32
    %c0_i32_1 = arith.constant 0 : i32
    return %c0_i32, %c0_i32_0 : i32, i32
  }
}

</mosaic_0001>

<bundles_post_ra>
// kernel: attention_block.3
= control target key start
LH: loop header
LB: loop body
LE: loop exit
PB: predicated region body
PF: predicated region fallthrough
CT: control target
= control target key end

     0   :  { %s770_s24 = smov 0   ;;  %s772_s25 = smov 0   ;;  %s851_s0 = inlined_call_operand.vmem [shape: f32[2,4,256], index: 0, kind: input, shape index: {}]   ;;  %s852_s1 = inlined_call_operand.vmem [shape: f32[2,4,256], index: 1, kind: input, shape index: {}]   ;;  %s853_s2 = inlined_call_operand.vmem [shape: f32[8,4], index: 2, kind: input, shape index: {}]   ;;  %s854_s3 = inlined_call_operand.vmem [shape: f32[8,4], index: 3, kind: input, shape index: {}]   ;;  %s855_s4 = inlined_call_operand.vmem [shape: f32[8,1], index: 4, kind: output, shape index: {0}]   ;;  %s856_s5 = inlined_call_operand.vmem [shape: f32[8,1], index: 5, kind: output, shape index: {1}]   ;;  %s857_s6 = inlined_call_operand.vmem [shape: f32[8,1], index: 6, kind: output, shape index: {2}]   ;;  %s858_s7 = inlined_call_operand.vmem [shape: f32[8,1], index: 7, kind: output, shape index: {3}]  }
   0x1   :  { %s774_s26 = smov 0  }
   0x2 LB: > { %s30_s27 = sadd.s32 1, %s719_s25  ;;  %p653_p0 = scmp.ge.s32.totalorder %s723_s26, 1  ;;  %s723_s26 = sphi %s774_s26, %s18_s26   ;;  %s719_s25 = sphi %s772_s25, %s860_s25   ;;  %s715_s24 = sphi %s770_s24, %s859_s24  }
   0x3   : > { %p32_p1 = scmp.ge.s32.totalorder %s30_s27, 2  ;;  %p260_p2 = scmp.lt.s32.totalorder %s723_s26, 3 }
   0x5   : > { %s862_s27 = smov (%p32_p1, %s30_s27), 0  ;;  %p261_p3 = pnand %p653_p0, %p260_p2 }
   0x6   : > { %p301_p4 = scmp.lt.s32.totalorder (!%p261_p3), %s715_s24, 1  ;;  %p320_p5 = scmp.eq.s32.totalorder (!%p261_p3), %s715_s24, 0 }
   0x7   : > { %264 = sbr.rel (%p261_p3) target bundleno = 325 (0x145), region = 36 }
   0xe   : > { %s864_s24 = smov (!%p301_p4, %s715_s24), 1  ;;  %325 = sbr.rel (!%p320_p5) target bundleno = 21 (0x15), region = 40 }
   0xf   : > { %s661_s28 = sshll.u32 %s864_s24, 3  ;;  %vm326_vm0 = vcmask (%p320_p5), 7168   ;;  %v725_v0 = vmov (%p320_p5), 0.0  }
  0x10   : > { %s791_s8 = scalar_lea.vmem %s851_s0, %s661_s28  ;;  %s796_s11 = scalar_lea.vmem %s852_s1, %s661_s28  ;;  %327 = vst.msk [vmem:[%s855_s4] sm:$0xff] (%p320_p5), %vm326_vm0, %v725_v0  ;;  %328 = vst.msk [vmem:[%s856_s5] sm:$0xff] (%p320_p5), %vm326_vm0, %v725_v0 }
  0x11   : > { %329 = vst.msk [vmem:[%s857_s6] sm:$0xff] (%p320_p5), %vm326_vm0, %v725_v0  ;;  %330 = vst.msk [vmem:[%s858_s7] sm:$0xff] (%p320_p5), %vm326_vm0, %v725_v0 }
  0x15 PF: > { %v437_v1 = vld [vmem:[%s854_s3] sm:$0xff]  ;;  %v726_v3 = vmov 0   ;;  %v727_v4 = vmov 1   ;;  %v728_v5 = vmov 2   ;;  %v729_v6 = vmov 3  }
  0x16   : > { %v331_v2 = vld [vmem:[%s853_s2] sm:$0xff]  ;;  %695 = vset.pattern.permute.xlu1 %v726_v3  ;;  %693 = vset.pattern.permute.xlu0 %v726_v3  ;;  %v339_v7 = vlaneseq  ;;  %vm548_vm1 = vcmask 7168  }
  0x17   : > { %441 = vperm.xlu1 %695, %v437_v1   ;;  %335 = vperm.xlu0 %693, %v331_v2   ;;  %v332_v11 = vld [vmem:[%s791_s8] sm:$0xff] }
  0x18   : > { %v340_v8 = vshrl.u32 %v339_v7, 7  ;;  %v438_v22 = vld [vmem:[%s796_s11] sm:$0xff] }
  0x1a   : > { %v365_v9 = vsub.s32 1, %v340_v8  ;;  %v369_v10 = vsub.s32 5, %v340_v8  ;;  %v341_v12 = vsub.s32 0, %v340_v8  ;;  %v345_v13 = vsub.s32 4, %v340_v8 }
  0x1b   : > { %696 = vset.pattern.permute.xlu1 %v727_v4  ;;  %694 = vset.pattern.permute.xlu0 %v727_v4  ;;  %v391_v16 = vsub.s32 2, %v340_v8  ;;  %v395_v17 = vsub.s32 6, %v340_v8  ;;  %v417_v25 = vsub.s32 3, %v340_v8  ;;  %v421_v26 = vsub.s32 7, %v340_v8 }
  0x1c   : > { %466 = vperm.xlu1 %696, %v437_v1   ;;  %360 = vperm.xlu0 %694, %v331_v2   ;;  %v342_v18 = vrot.slane %v332_v11, %v341_v12  ;;  %v346_v19 = vrot.slane %v332_v11, %v345_v13  ;;  %v366_v20 = vrot.slane %v332_v11, %v365_v9 }
  0x1d   : > { %v370_v21 = vrot.slane %v332_v11, %v369_v10  ;;  %v392_v23 = vrot.slane %v332_v11, %v391_v16  ;;  %v396_v24 = vrot.slane %v332_v11, %v395_v17  ;;  %v472_v27 = vrot.slane %v438_v22, %v365_v9 }
  0x1e   : > { %v476_v28 = vrot.slane %v438_v22, %v369_v10  ;;  %v352_v30 = vrot.slane %v342_v18, %v341_v12  ;;  %v356_v31 = vrot.slane %v346_v19, %v341_v12  ;;  %v376_v32 = vrot.slane %v366_v20, %v365_v9 }
  0x1f   : > { %v380_v33 = vrot.slane %v370_v21, %v365_v9  ;;  %v448_v35 = vrot.slane %v438_v22, %v341_v12  ;;  %v452_v36 = vrot.slane %v438_v22, %v345_v13  ;;  %v498_v37 = vrot.slane %v438_v22, %v391_v16 }
  0x20   : > { %697 = vset.pattern.permute.xlu1 %v728_v5  ;;  %698 = vset.pattern.permute.xlu0 %v728_v5  ;;  %v502_v38 = vrot.slane %v438_v22, %v395_v17  ;;  %v402_v39 = vrot.slane %v392_v23, %v391_v16  ;;  %v406_v40 = vrot.slane %v396_v24, %v391_v16 }
  0x21   : > { %386 = vperm.xlu1 %697, %v331_v2   ;;  %492 = vperm.xlu0 %698, %v437_v1   ;;  %v418_v41 = vrot.slane %v332_v11, %v417_v25  ;;  %v422_v42 = vrot.slane %v332_v11, %v421_v26  ;;  %v482_v43 = vrot.slane %v472_v27, %v365_v9 }
  0x22   : > { %v486_v44 = vrot.slane %v476_v28, %v365_v9  ;;  %v524_v45 = vrot.slane %v438_v22, %v417_v25  ;;  %v528_v46 = vrot.slane %v438_v22, %v421_v26  ;;  %v458_v52 = vrot.slane %v448_v35, %v341_v12  ;;  %v558_v35 = vld [vmem:[%s857_s6] sm:$0xff] }
  0x23   : > { %v462_v53 = vrot.slane %v452_v36, %v341_v12  ;;  %v508_v54 = vrot.slane %v498_v37, %v391_v16  ;;  %v512_v55 = vrot.slane %v502_v38, %v391_v16  ;;  %v428_v59 = vrot.slane %v418_v41, %v417_v25 }
  0x24   : > { %v432_v60 = vrot.slane %v422_v42, %v417_v25 }
  0x25   : > { %699 = vset.pattern.permute.xlu1 %v729_v6  ;;  %700 = vset.pattern.permute.xlu0 %v729_v6 }
  0x26   : > { %412 = vperm.xlu1 %699, %v331_v2   ;;  %v538_v2 = vrot.slane %v528_v46, %v417_v25 }
  0x2a   : > { %518 = vperm.xlu1 %699, %v437_v1   ;;  %v534_v1 = vrot.slane %v524_v45, %v417_v25 }
  0x96   : > { %v442_v14 = vpop.permute.xlu1 %441  ;;  %v336_v15 = vpop.permute.xlu0 %335 }
  0x97   : > { %v357_v47 = vmul.f32 %v352_v30, %v336_v15  ;;  %v358_v48 = vmul.f32 %v356_v31, %v336_v15  ;;  %v463_v3 = vmul.f32 %v458_v52, %v442_v14  ;;  %v464_v4 = vmul.f32 %v462_v53, %v442_v14  ;;  %v543_v31 = vld [vmem:[%s855_s4] sm:$0xff] }
  0x9b   : > { %v467_v29 = vpop.permute.xlu1 %466  ;;  %v361_v34 = vpop.permute.xlu0 %360 }
  0x9c   : > { %v381_v49 = vmul.f32 %v376_v32, %v361_v34  ;;  %v382_v50 = vmul.f32 %v380_v33, %v361_v34  ;;  %v487_v61 = vmul.f32 %v482_v43, %v467_v29  ;;  %v488_v62 = vmul.f32 %v486_v44, %v467_v29  ;;  %v550_v34 = vld [vmem:[%s856_s5] sm:$0xff] }
  0x9e   : > { %v383_v63 = vadd.f32 %v381_v49, %v357_v47  ;;  %v384_v0 = vadd.f32 %v382_v50, %v358_v48  ;;  %v489_v12 = vadd.f32 %v487_v61, %v463_v3  ;;  %v490_v13 = vadd.f32 %v488_v62, %v464_v4 }
  0xa0   : > { %v387_v51 = vpop.permute.xlu1 %386  ;;  %v493_v58 = vpop.permute.xlu0 %492 }
  0xa1   : > { %v407_v56 = vmul.f32 %v402_v39, %v387_v51  ;;  %v408_v57 = vmul.f32 %v406_v40, %v387_v51  ;;  %v513_v5 = vmul.f32 %v508_v54, %v493_v58  ;;  %v514_v6 = vmul.f32 %v512_v55, %v493_v58  ;;  %v564_v40 = vld [vmem:[%s858_s7] sm:$0xff] }
  0xa3   : > { %v409_v8 = vadd.f32 %v407_v56, %v383_v63  ;;  %v410_v9 = vadd.f32 %v408_v57, %v384_v0  ;;  %v515_v17 = vadd.f32 %v513_v5, %v489_v12  ;;  %v516_v18 = vadd.f32 %v514_v6, %v490_v13 }
  0xa5   : > { %v413_v7 = vpop.permute.xlu1 %412 }
  0xa6   : > { %v433_v10 = vmul.f32 %v428_v59, %v413_v7  ;;  %v434_v11 = vmul.f32 %v432_v60, %v413_v7 }
  0xa8   : > { %v435_v15 = vadd.f32 %v433_v10, %v409_v8  ;;  %v436_v16 = vadd.f32 %v434_v11, %v410_v9 }
  0xa9   : > { %v519_v19 = vpop.permute.xlu1 %518 }
  0xaa   : > { %v539_v20 = vmul.f32 %v534_v1, %v519_v19  ;;  %v540_v21 = vmul.f32 %v538_v2, %v519_v19  ;;  %v544_v22 = vadd.f32 %v436_v16, %v435_v15  ;;  %v551_v23 = vmul.f32 %v435_v15, %v435_v15 }
  0xab   : > { %v552_v24 = vmul.f32 %v436_v16, %v436_v16 }
  0xac   : > { %545 = vadd.xlane.f32.xlu0 %v544_v22  ;;  %v541_v14 = vadd.f32 %v539_v20, %v515_v17  ;;  %v542_v25 = vadd.f32 %v540_v21, %v516_v18 }
  0xad   : > { %v553_v26 = vadd.f32 %v552_v24, %v551_v23 }
  0xae   : > { %v559_v27 = vadd.f32 %v542_v25, %v541_v14  ;;  %v565_v28 = vmul.f32 %v541_v14, %v541_v14  ;;  %v566_v29 = vmul.f32 %v542_v25, %v542_v25 }
  0xaf   : > { %554 = vadd.xlane.f32.xlu1 %v553_v26 }
  0xb0   : > { %560 = vadd.xlane.f32.xlu0 %v559_v27  ;;  %v567_v30 = vadd.f32 %v566_v29, %v565_v28 }
  0xb4   : > { %568 = vadd.xlane.f32.xlu0 %v567_v30 }
 0x139   : > { %v546_v32 = vpop.xlane.xlu0 %545 }
 0x13a   : > { %v547_v33 = vadd.f32 %v546_v32, %v543_v31 }
 0x13c   : > { %549 = vst.msk [vmem:[%s855_s4] sm:$0xff] %vm548_vm1, %v547_v33  ;;  %v555_v36 = vpop.xlane.xlu1 %554 }
 0x13d   : > { %v556_v37 = vadd.f32 %v555_v36, %v550_v34  ;;  %v561_v38 = vpop.xlane.xlu0 %560 }
 0x13e   : > { %v562_v39 = vadd.f32 %v561_v38, %v558_v35 }
 0x13f   : > { %557 = vst.msk [vmem:[%s856_s5] sm:$0xff] %vm548_vm1, %v556_v37 }
 0x140   : > { %563 = vst.msk [vmem:[%s857_s6] sm:$0xff] %vm548_vm1, %v562_v39 }
 0x141   : > { %v569_v41 = vpop.xlane.xlu0 %568 }
 0x142   : > { %v570_v42 = vadd.f32 %v569_v41, %v564_v40 }
 0x144   : > { %571 = vst.msk [vmem:[%s858_s7] sm:$0xff] %vm548_vm1, %v570_v42 }
 0x145 PF: > { %s18_s26 = sadd.s32 1, %s723_s26   ;;  %s859_s24 = smov %s719_s25 }
 0x146   : > { %p15_p6 = scmp.ge.s32.totalorder %s18_s26, 4   ;;  %s860_s25 = smov %s862_s27 }
 0x148   :  { %17 = sbr.rel (!%p15_p6) target bundleno = 2 (0x2), region = 93 }

// kernel: attention_block.5
= control target key start
LH: loop header
LB: loop body
LE: loop exit
PB: predicated region body
PF: predicated region fallthrough
CT: control target
= control target key end

     0   :  { %s569_s24 = smov 0   ;;  %s571_s25 = smov 0   ;;  %s609_s0 = inlined_call_operand.vmem [shape: f32[2,4,256], index: 0, kind: input, shape index: {}]   ;;  %s610_s1 = inlined_call_operand.vmem [shape: f32[2,1,256], index: 1, kind: input, shape index: {}]   ;;  %s611_s2 = inlined_call_operand.<no memory space> [shape: f32[1,1], index: 2, kind: input, shape index: {}]   ;;  %s612_s5 = inlined_call_operand.vmem [shape: f32[2,4,256], index: 5, kind: output, shape index: {}]   ;;  %s613_s3 = inlined_call_operand.<no memory space> [shape: f32[1,1], index: 3, kind: input, shape index: {}]   ;;  %s614_s4 = inlined_call_operand.<no memory space> [shape: f32[1,1], index: 4, kind: input, shape index: {}]  }
   0x1   :  { %v10_v0 = vstv %s611_s2  ;;  %v12_v1 = vstv %s613_s3  ;;  %v14_v2 = vstv %s614_s4  ;;  %s573_s26 = smov 0  }
   0x2   :  { %11 = vst [vmem:[#allocation2] sm:$0x1] %v10_v0  ;;  %13 = vst [vmem:[#allocation3] sm:$0x1] %v12_v1 }
   0x3   :  { %15 = vst [vmem:[#allocation4] sm:$0x1] %v14_v2 }
   0x4 LB: > { %s33_s2 = sadd.s32 1, %s523_s25  ;;  %p463_p0 = scmp.ge.s32.totalorder %s527_s26, 1  ;;  %s527_s26 = sphi %s573_s26, %s21_s26   ;;  %s523_s25 = sphi %s571_s25, %s616_s25   ;;  %s519_s24 = sphi %s569_s24, %s615_s24  }
   0x5   : > { %p35_p1 = scmp.ge.s32.totalorder %s33_s2, 2  ;;  %p230_p2 = scmp.lt.s32.totalorder %s527_s26, 3 }
   0x7   : > { %s618_s2 = smov (%p35_p1, %s33_s2), 0  ;;  %p231_p3 = pnand %p463_p0, %p230_p2 }
   0x8   : > { %v529_v4 = vmov (!%p231_p3), 0   ;;  %p275_p4 = scmp.lt.s32.totalorder (!%p231_p3), %s519_s24, 1  ;;  %v311_v7 = vlaneseq (!%p231_p3) }
   0x9   : > { %234 = sbr.rel (%p231_p3) target bundleno = 181 (0xb5), region = 40  ;;  %v305_v3 = vld [vmem:[#allocation2] sm:$0x1] (!%p231_p3)  ;;  %499 = vset.pattern.permute.xlu0 (!%p231_p3), %v529_v4  ;;  %500 = vset.pattern.permute.xlu1 (!%p231_p3), %v529_v4  ;;  %v316_v6 = vld [vmem:[#allocation3] sm:$0x1] (!%p231_p3) }
   0xa   : > { %v333_v5 = vld [vmem:[#allocation4] sm:$0x1] (!%p231_p3)  ;;  %308 = vperm.xlu0 (!%p231_p3), %499, %v305_v3   ;;  %v312_v8 = vshrl.u32 (!%p231_p3), %v311_v7, 7 }
   0xb   : > { %336 = vperm.xlu1 (!%p231_p3), %500, %v333_v5  }
   0xc   : > { %v313_v9 = vsub.s32 (!%p231_p3), 0, %v312_v8  ;;  %v351_v22 = vsub.s32 (!%p231_p3), 1, %v312_v8 }
   0xe   : > { %319 = vperm.xlu0 (!%p231_p3), %499, %v316_v6  }
  0x10   : > { %s620_s24 = smov (!%p275_p4, %s519_s24), 1 }
  0x11   : > { %s466_s3 = sshll.u32 %s620_s24, 1  ;;  %s472_s29 = sshll.u32 %s620_s24, 3 }
  0x12   : > { %s291_s28 = scalar_lea.vmem %s610_s1, %s466_s3  ;;  %s282_s7 = scalar_lea.vmem %s609_s0, %s472_s29 }
  0x13   : > { %v304_v12 = vld [vmem:[%s291_s28] sm:$0x3]  ;;  %s301_s10 = scalar_lea.vmem %s612_s5, %s472_s29 }
  0x14   : > { %v303_v27 = vld [vmem:[%s282_s7] sm:$0xff] }
  0x89   : > { %v309_v10 = vpop.permute.xlu0 %308 }
  0x8a   : > { %v314_v11 = vrot.slane %v309_v10, %v313_v9  ;;  %v337_v20 = vpop.permute.xlu1 %336 }
  0x8b   : > { %v342_v21 = vrot.slane %v337_v20, %v313_v9 }
  0x8c   : > { %v315_v14 = vmul.f32 %v314_v11, %v304_v12 }
  0x8d   : > { %v320_v13 = vpop.permute.xlu0 %319 }
  0x8e   : > { %v325_v15 = vrot.slane %v320_v13, %v313_v9 }
  0x90   : > { %v326_v16 = vadd.f32 %v325_v15, %v315_v14 }
  0x92   : > { %v469_v17 = vmul.f32 -1.442695, %v326_v16 }
  0x94   : > { %501 = vpow2.f32 %v469_v17 }
  0x9e   : > { %v502_v18 = vpop.eup %501 }
  0x9f   : > { %v330_v19 = vadd.f32 1.0, %v502_v18 }
  0xa1   : > { %503 = vrcp.f32 %v330_v19 }
  0xab   : > { %v504_v23 = vpop.eup %503 }
  0xac   : > { %v343_v24 = vmul.f32 %v504_v23, %v342_v21 }
  0xae   : > { %v348_v25 = vrot.slane %v343_v24, %v313_v9  ;;  %v352_v26 = vrot.slane %v343_v24, %v351_v22 }
  0xb0   : > { %v353_v28 = vcombine.low %v348_v25, %v352_v26 }
  0xb2   : > { %v355_v29 = vmul.f32 %v353_v28, %v303_v27 }
  0xb4   : > { %356 = vst [vmem:[%s301_s10] sm:$0xff] %v355_v29 }
  0xb5 PF: > { %s21_s26 = sadd.s32 1, %s527_s26   ;;  %s615_s24 = smov %s523_s25 }
  0xb6   : > { %p18_p5 = scmp.ge.s32.totalorder %s21_s26, 4   ;;  %s616_s25 = smov %s618_s2 }
  0xb8   :  { %20 = sbr.rel (!%p18_p5) target bundleno = 4 (0x4), region = 73 }

// kernel: attention_block.4
= control target key start
LH: loop header
LB: loop body
LE: loop exit
PB: predicated region body
PF: predicated region fallthrough
CT: control target
= control target key end

     0   :  { %17 = vsyncpa [#allocation3], 0  ;;  %s1436_s0 = inlined_call_operand.vmem [shape: f32[2,4,256], index: 0, kind: input, shape index: {}]   ;;  %s1437_s1 = inlined_call_operand.vmem [shape: f32[2,4,256], index: 1, kind: input, shape index: {}]   ;;  %s1438_s2 = inlined_call_operand.vmem [shape: f32[8,4], index: 2, kind: input, shape index: {}]   ;;  %s1439_s3 = inlined_call_operand.vmem [shape: f32[8,4], index: 3, kind: input, shape index: {}]   ;;  %s1440_s4 = inlined_call_operand.vmem [shape: f32[1,8], index: 4, kind: input, shape index: {}]   ;;  %s1441_s5 = inlined_call_operand.vmem [shape: f32[8,1], index: 5, kind: input, shape index: {}]   ;;  %s1442_s6 = inlined_call_operand.vmem [shape: f32[8,1], index: 6, kind: input, shape index: {}]   ;;  %s1443_s7 = inlined_call_operand.vmem [shape: f32[8,1], index: 7, kind: input, shape index: {}]   ;;  %s1444_s8 = inlined_call_operand.vmem [shape: f32[8,1], index: 8, kind: input, shape index: {}]   ;;  %s1445_s9 = inlined_call_operand.vmem [shape: f32[2,1,256], index: 9, kind: output, shape index: {0}]   ;;  %s1446_s10 = inlined_call_operand.hbm [shape: f32[1,1], index: 10, kind: output, shape index: {1}]   ;;  %s1447_s11 = inlined_call_operand.hbm [shape: f32[1,1], index: 11, kind: output, shape index: {2}]  }
   0x1   :  { %18 = vsyncpa [#allocation5], 0  ;;  %s1280_s17 = smov 0   ;;  %s1282_s18 = smov 0  }
   0x2   :  { %s1284_s19 = smov 0  }
   0x3 LB: > { %s1040_s20 = sadd.s32 4294967295, %s1206_s19   ;;  %s36_s21 = sadd.s32 1, %s1202_s18  ;;  %s1206_s19 = sphi %s1284_s19, %s24_s19   ;;  %s1202_s18 = sphi %s1282_s18, %s1450_s18   ;;  %s1198_s17 = sphi %s1280_s17, %s1449_s17  }
   0x4   : > { %p38_p0 = scmp.ge.s32.totalorder %s36_s21, 2  ;;  %p1044_p1 = scmp.ge.s32.totalorder %s1206_s19, 1 }
   0x5   : > { %p372_p2 = scmp.lt.s32.totalorder %s1206_s19, 3 }
   0x6   : > { %s1452_s21 = smov (%p38_p0, %s36_s21), 0 }
   0x7   : > { %p373_p3 = pnand %p1044_p1, %p372_p2 }
   0x8   : > { %p429_p4 = scmp.lt.s32.totalorder (!%p373_p3), %s1198_s17, 1  ;;  %p457_p5 = scmp.eq.s32.totalorder (!%p373_p3), %s1198_s17, 0 }
   0x9   : > { %376 = sbr.rel (%p373_p3) target bundleno = 400 (0x190), region = 56 }
  0x10   : > { %s1454_s17 = smov (!%p429_p4, %s1198_s17), 1  ;;  %462 = sbr.rel (!%p457_p5) target bundleno = 23 (0x17), region = 60 }
  0x11   : > { %s1057_s22 = sshll.u32 %s1454_s17, 3  ;;  %s1049_s23 = sshll.u32 %s1454_s17, 1  ;;  %vm463_vm0 = vcmask (%p457_p5), 0   ;;  %v1208_v0 = vmov (%p457_p5), 0.0  }
  0x12   : > { %s1302_s26 = scalar_lea.vmem %s1436_s0, %s1057_s22  ;;  %s1307_s29 = scalar_lea.vmem %s1437_s1, %s1057_s22  ;;  %464 = vst.msk [vmem:[#allocation2] sm:$0x1] (%p457_p5), %vm463_vm0, %v1208_v0  ;;  %465 = vst.msk [vmem:[#allocation4] sm:$0x1] (%p457_p5), %vm463_vm0, %v1208_v0 }
  0x13   : > { %s1312_s13 = scalar_lea.vmem %s1445_s9, %s1049_s23 }
  0x17 PF: > { %v588_v1 = vld [vmem:[%s1439_s3] sm:$0xff]  ;;  %v1209_v3 = vmov 1   ;;  %v1210_v4 = vmov 0   ;;  %v1211_v5 = vmov 2   ;;  %v1212_v7 = vmov 3   ;;  %p1369_p6 = scmp.eq.s32.totalorder %s1040_s20, 1 }
  0x18   : > { %v466_v2 = vld [vmem:[%s1438_s2] sm:$0xff]  ;;  %1108 = vset.pattern.permute.xlu0 %v1209_v3  ;;  %1109 = vset.pattern.permute.xlu1 %v1210_v4  ;;  %v1213_v12 = vmov 6   ;;  %v1214_v13 = vmov 7   ;;  %v1215_v14 = vmov 4   ;;  %v1216_v15 = vmov 5   ;;  %s1219_s17 = smov [#allocation4]  }
  0x19   : > { %592 = vperm.xlu1 %1109, %v588_v1   ;;  %495 = vperm.xlu0 %1108, %v466_v2   ;;  %v572_v6 = vld [vmem:[%s1441_s5] sm:$0xff]  ;;  %v474_v16 = vlaneseq  ;;  %vm876_vm1 = vcmask 1040384   ;;  %vm883_vm3 = vcmask 0   ;;  %s925_s22 = sshll.u32 %s1219_s17, 4  ;;  %s1374_s22 = int_to_ptr.vmem [resolvable:$true] %s925_s22 }
  0x1a   : > { %v702_v8 = vld [vmem:[%s1444_s8] sm:$0xff] }
  0x1b   : > { %v714_v9 = vld [vmem:[%s1440_s4] sm:$0x1]  ;;  %v1336_v17 = vshrl.u32 %v474_v16, 7  ;;  %vm872_vm2 = vcmp.lt.s32.totalorder %v474_v16, 256 }
  0x1c   : > { %v694_v10 = vld [vmem:[%s1443_s7] sm:$0xff] }
  0x1d   : > { %1110 = vset.pattern.permute.xlu1 %v1209_v3  ;;  %1112 = vset.pattern.permute.xlu0 %v1211_v5  ;;  %v580_v11 = vld [vmem:[%s1442_s6] sm:$0xff]  ;;  %v500_v20 = vsub.s32 1, %v1336_v17  ;;  %v504_v21 = vsub.s32 5, %v1336_v17  ;;  %v1342_v23 = vsub.s32 0, %v1336_v17  ;;  %v480_v24 = vsub.s32 4, %v1336_v17 }
  0x1e   : > { %617 = vperm.xlu1 %1110, %v588_v1   ;;  %643 = vperm.xlu0 %1112, %v588_v1   ;;  %v467_v19 = vld [vmem:[%s1302_s26] sm:$0xff]  ;;  %v526_v32 = vsub.s32 2, %v1336_v17  ;;  %v530_v33 = vsub.s32 6, %v1336_v17  ;;  %v552_v38 = vsub.s32 3, %v1336_v17  ;;  %v556_v39 = vsub.s32 7, %v1336_v17  ;;  %s1218_s26 = smov [#allocation2]  }
  0x1f   : > { %v589_v25 = vld [vmem:[%s1307_s29] sm:$0xff]  ;;  %v501_v26 = vrot.slane %v467_v19, %v500_v20  ;;  %v505_v27 = vrot.slane %v467_v19, %v504_v21  ;;  %v477_v28 = vrot.slane %v467_v19, %v1342_v23  ;;  %v481_v29 = vrot.slane %v467_v19, %v480_v24  ;;  %s914_s29 = sshll.u32 %s1218_s26, 4  ;;  %s915_s29 = int_to_ptr.vmem [resolvable:$true] %s914_s29 }
  0x20   : > { %v623_v30 = vrot.slane %v589_v25, %v500_v20  ;;  %v627_v31 = vrot.slane %v589_v25, %v504_v21  ;;  %v599_v34 = vrot.slane %v589_v25, %v1342_v23  ;;  %v603_v35 = vrot.slane %v589_v25, %v480_v24  ;;  %s1130_s20 = scalar_lea.vmem %s915_s29, 32  ;;  %p1131_p10 = scmp.lt.s32.totalorder %s915_s29, %s915_s29 }
  0x21   : > { %v511_v40 = vrot.slane %v501_v26, %v500_v20  ;;  %v515_v41 = vrot.slane %v505_v27, %v500_v20  ;;  %v487_v42 = vrot.slane %v477_v28, %v1342_v23  ;;  %v491_v43 = vrot.slane %v481_v29, %v1342_v23 }
  0x22   : > { %1111 = vset.pattern.permute.xlu1 %v1211_v5  ;;  %1113 = vset.pattern.permute.xlu0 %v1210_v4  ;;  %v633_v44 = vrot.slane %v623_v30, %v500_v20  ;;  %v637_v45 = vrot.slane %v627_v31, %v500_v20  ;;  %v649_v46 = vrot.slane %v589_v25, %v526_v32 }
  0x23   : > { %521 = vperm.xlu1 %1111, %v466_v2   ;;  %470 = vperm.xlu0 %1113, %v466_v2   ;;  %v653_v47 = vrot.slane %v589_v25, %v530_v33  ;;  %v609_v48 = vrot.slane %v599_v34, %v1342_v23  ;;  %v613_v49 = vrot.slane %v603_v35, %v1342_v23 }
  0x24   : > { %v527_v50 = vrot.slane %v467_v19, %v526_v32  ;;  %v531_v51 = vrot.slane %v467_v19, %v530_v33  ;;  %v553_v54 = vrot.slane %v467_v19, %v552_v38  ;;  %v557_v55 = vrot.slane %v467_v19, %v556_v39 }
  0x25   : > { %v675_v56 = vrot.slane %v589_v25, %v552_v38  ;;  %v679_v57 = vrot.slane %v589_v25, %v556_v39  ;;  %v659_v0 = vrot.slane %v649_v46, %v526_v32 }
  0x27   : > { %1114 = vset.pattern.permute.xlu1 %v1212_v7  ;;  %575 = vperm.xlu0 %1113, %v572_v6   ;;  %v563_v6 = vrot.slane %v553_v54, %v552_v38 }
  0x28   : > { %547 = vperm.xlu1 %1114, %v466_v2   ;;  %v537_v2 = vrot.slane %v527_v50, %v526_v32 }
  0x2b   : > { %705 = vperm.xlu0 %1113, %v702_v8  }
  0x2c   : > { %669 = vperm.xlu1 %1114, %v588_v1   ;;  %v663_v1 = vrot.slane %v653_v47, %v526_v32 }
  0x2f   : > { %717 = vperm.xlu0 %1113, %v714_v9  }
  0x30   : > { %1115 = vset.pattern.permute.xlu1 %v1210_v4 }
  0x31   : > { %697 = vperm.xlu1 %1115, %v694_v10  }
  0x33   : > { %1118 = vset.pattern.permute.xlu0 %v1212_v7  ;;  %v567_v7 = vrot.slane %v557_v55, %v552_v38 }
  0x34   : > { %763 = vperm.xlu0 %1118, %v714_v9  }
  0x35   : > { %583 = vperm.xlu1 %1115, %v580_v11   ;;  %v685_v11 = vrot.slane %v675_v56, %v552_v38 }
  0x38   : > { %1121 = vset.pattern.permute.xlu0 %v1213_v12  ;;  %v689_v12 = vrot.slane %v679_v57, %v552_v38 }
  0x39   : > { %1116 = vset.pattern.permute.xlu1 %v1209_v3  ;;  %817 = vperm.xlu0 %1121, %v714_v9   ;;  %v541_v3 = vrot.slane %v531_v51, %v526_v32 }
  0x3a   : > { %727 = vperm.xlu1 %1116, %v714_v9  }
  0x3d   : > { %1123 = vset.pattern.permute.xlu0 %v1214_v13 }
  0x3e   : > { %1117 = vset.pattern.permute.xlu1 %v1211_v5 }
  0x3f   : > { %745 = vperm.xlu1 %1117, %v714_v9  }
  0x43   : > { %1119 = vset.pattern.permute.xlu1 %v1215_v14 }
  0x44   : > { %781 = vperm.xlu1 %1119, %v714_v9  }
  0x48   : > { %1120 = vset.pattern.permute.xlu1 %v1216_v15 }
  0x49   : > { %799 = vperm.xlu1 %1120, %v714_v9  }
  0x4d   : > { %1122 = vset.pattern.permute.xlu1 %v1214_v13 }
  0x4e   : > { %835 = vperm.xlu1 %1122, %v714_v9  }
  0x98   : > { %v593_v18 = vpop.permute.xlu1 %592  ;;  %v496_v22 = vpop.permute.xlu0 %495 }
  0x99   : > { %v516_v58 = vmul.f32 %v511_v40, %v496_v22  ;;  %v517_v59 = vmul.f32 %v515_v41, %v496_v22  ;;  %v614_v4 = vmul.f32 %v609_v48, %v593_v18  ;;  %v615_v5 = vmul.f32 %v613_v49, %v593_v18 }
  0x9d   : > { %v618_v36 = vpop.permute.xlu1 %617  ;;  %v644_v37 = vpop.permute.xlu0 %643 }
  0x9e   : > { %v638_v62 = vmul.f32 %v633_v44, %v618_v36  ;;  %v639_v63 = vmul.f32 %v637_v45, %v618_v36  ;;  %v664_v15 = vmul.f32 %v659_v0, %v644_v37  ;;  %v665_v19 = vmul.f32 %v663_v1, %v644_v37 }
  0xa0   : > { %v640_v13 = vadd.f32 %v638_v62, %v614_v4  ;;  %v641_v14 = vadd.f32 %v639_v63, %v615_v5 }
  0xa2   : > { %v522_v52 = vpop.permute.xlu1 %521  ;;  %v471_v53 = vpop.permute.xlu0 %470  ;;  %v666_v18 = vadd.f32 %v664_v15, %v640_v13  ;;  %v667_v29 = vadd.f32 %v665_v19, %v641_v14 }
  0xa3   : > { %v492_v60 = vmul.f32 %v487_v42, %v471_v53  ;;  %v493_v61 = vmul.f32 %v491_v43, %v471_v53  ;;  %v542_v20 = vmul.f32 %v537_v2, %v522_v52  ;;  %v543_v21 = vmul.f32 %v541_v3, %v522_v52 }
  0xa5   : > { %v518_v8 = vadd.f32 %v516_v58, %v492_v60  ;;  %v519_v9 = vadd.f32 %v517_v59, %v493_v61 }
  0xa6   : > { %v576_v27 = vpop.permute.xlu0 %575 }
  0xa7   : > { %v548_v10 = vpop.permute.xlu1 %547  ;;  %v544_v25 = vadd.f32 %v542_v20, %v518_v8  ;;  %v545_v26 = vadd.f32 %v543_v21, %v519_v9 }
  0xa8   : > { %v568_v22 = vmul.f32 %v563_v6, %v548_v10  ;;  %v569_v24 = vmul.f32 %v567_v7, %v548_v10 }
  0xaa   : > { %v570_v34 = vadd.f32 %v568_v22, %v544_v25  ;;  %v571_v35 = vadd.f32 %v569_v24, %v545_v26  ;;  %v706_v38 = vpop.permute.xlu0 %705 }
  0xab   : > { %v670_v28 = vpop.permute.xlu1 %669 }
  0xac   : > { %v690_v30 = vmul.f32 %v685_v11, %v670_v28  ;;  %v691_v31 = vmul.f32 %v689_v12, %v670_v28  ;;  %v578_v40 = vmul.f32 %v576_v27, %v570_v34  ;;  %v579_v41 = vmul.f32 %v576_v27, %v571_v35 }
  0xae   : > { %v692_v32 = vadd.f32 %v690_v30, %v666_v18  ;;  %v693_v33 = vadd.f32 %v691_v31, %v667_v29  ;;  %v718_v47 = vpop.permute.xlu0 %717 }
  0xaf   : > { %v723_v59 = vrot.slane %v718_v47, %v1342_v23 }
  0xb0   : > { %v698_v36 = vpop.permute.xlu1 %697 }
  0xb1   : > { %v700_v39 = vmul.f32 %v698_v36, %v692_v32  ;;  %v701_v37 = vmul.f32 %v698_v36, %v693_v33  ;;  %v1217_v32 = vmov 1966171168  }
  0xb2   : > { %v856_v33 = vunpack.c.l.s4 %v1217_v32 }
  0xb3   : > { %v708_v43 = vadd.f32 %v706_v38, %v700_v39  ;;  %v709_v44 = vadd.f32 %v706_v38, %v701_v37  ;;  %v764_v56 = vpop.permute.xlu0 %763 }
  0xb4   : > { %v584_v42 = vpop.permute.xlu1 %583  ;;  %v769_v57 = vrot.slane %v764_v56, %v1342_v23 }
  0xb5   : > { %v586_v45 = vadd.f32 %v584_v42, %v578_v40  ;;  %v587_v46 = vadd.f32 %v584_v42, %v579_v41 }
  0xb7   : > { %v710_v48 = vadd.f32 %v708_v43, %v586_v45  ;;  %v711_v49 = vadd.f32 %v709_v44, %v587_v46  ;;  %v857_v44 = vunpack.c.0.s8 %v856_v33 }
  0xb8   : > { %v818_v10 = vpop.permute.xlu0 %817 }
  0xb9   : > { %v712_v50 = vmax.f32 %v710_v48, 0.0  ;;  %v713_v51 = vmax.f32 %v711_v49, 0.0  ;;  %v728_v52 = vpop.permute.xlu1 %727  ;;  %v823_v21 = vrot.slane %v818_v10, %v1342_v23 }
  0xba   : > { %v733_v53 = vrot.slane %v728_v52, %v1342_v23 }
  0xbb   : > { %v724_v63 = vmul.f32 %v723_v59, %v712_v50  ;;  %v725_v0 = vmul.f32 %v723_v59, %v713_v51  ;;  %v770_v3 = vmul.f32 %v769_v57, %v712_v50  ;;  %v771_v4 = vmul.f32 %v769_v57, %v713_v51 }
  0xbc   : > { %v734_v54 = vmul.f32 %v733_v53, %v712_v50  ;;  %v735_v55 = vmul.f32 %v733_v53, %v713_v51  ;;  %v824_v18 = vmul.f32 %v823_v21, %v712_v50  ;;  %v825_v29 = vmul.f32 %v823_v21, %v713_v51 }
  0xbd   : > { %v774_v14 = vrot.slane %v770_v3, 3  ;;  %v775_v20 = vrot.slane %v771_v4, 3  ;;  %v860_v53 = vsub.s32 %v857_v44, %v1336_v17  ;;  %v875_v17 = vld [vmem:[#allocation2] sm:$0x1] }
  0xbe   : > { %v746_v58 = vpop.permute.xlu1 %745  ;;  %v738_v60 = vrot.slane %v734_v54, 1  ;;  %v739_v61 = vrot.slane %v735_v55, 1  ;;  %v828_v40 = vrot.slane %v824_v18, 6  ;;  %v829_v41 = vrot.slane %v825_v29, 6 }
  0xbf   : > { %v751_v62 = vrot.slane %v746_v58, %v1342_v23 }
  0xc0   : > { %v742_v5 = vadd.f32 %v738_v60, %v724_v63  ;;  %v743_v6 = vadd.f32 %v739_v61, %v725_v0 }
  0xc1   : > { %v752_v1 = vmul.f32 %v751_v62, %v712_v50  ;;  %v753_v2 = vmul.f32 %v751_v62, %v713_v51 }
  0xc3   : > { %v756_v7 = vrot.slane %v752_v1, 2  ;;  %v757_v8 = vrot.slane %v753_v2, 2  ;;  %v782_v9 = vpop.permute.xlu1 %781  ;;  %v885_v1 = vld [vmem:[#allocation4] sm:$0x1] }
  0xc4   : > { %v787_v11 = vrot.slane %v782_v9, %v1342_v23 }
  0xc5   : > { %v760_v12 = vadd.f32 %v756_v7, %v742_v5  ;;  %v761_v13 = vadd.f32 %v757_v8, %v743_v6 }
  0xc6   : > { %v788_v15 = vmul.f32 %v787_v11, %v712_v50  ;;  %v789_v19 = vmul.f32 %v787_v11, %v713_v51 }
  0xc7   : > { %v778_v22 = vadd.f32 %v774_v14, %v760_v12  ;;  %v779_v25 = vadd.f32 %v775_v20, %v761_v13 }
  0xc8   : > { %v800_v24 = vpop.permute.xlu1 %799  ;;  %v792_v26 = vrot.slane %v788_v15, 4  ;;  %v793_v27 = vrot.slane %v789_v19, 4 }
  0xc9   : > { %v805_v28 = vrot.slane %v800_v24, %v1342_v23 }
  0xca   : > { %v796_v34 = vadd.f32 %v792_v26, %v778_v22  ;;  %v797_v35 = vadd.f32 %v793_v27, %v779_v25 }
  0xcb   : > { %v806_v30 = vmul.f32 %v805_v28, %v712_v50  ;;  %v807_v31 = vmul.f32 %v805_v28, %v713_v51 }
  0xcd   : > { %v810_v36 = vrot.slane %v806_v30, 5  ;;  %v811_v38 = vrot.slane %v807_v31, 5  ;;  %v836_v39 = vpop.permute.xlu1 %835 }
  0xce   : > { %v841_v37 = vrot.slane %v836_v39, %v1342_v23 }
  0xcf   : > { %v814_v42 = vadd.f32 %v810_v36, %v796_v34  ;;  %v815_v43 = vadd.f32 %v811_v38, %v797_v35 }
  0xd0   : > { %v842_v45 = vmul.f32 %v841_v37, %v712_v50  ;;  %v843_v46 = vmul.f32 %v841_v37, %v713_v51 }
  0xd1   : > { %v832_v47 = vadd.f32 %v828_v40, %v814_v42  ;;  %v833_v48 = vadd.f32 %v829_v41, %v815_v43 }
  0xd2   : > { %v846_v49 = vrot.slane %v842_v45, 7  ;;  %v847_v52 = vrot.slane %v843_v46, 7 }
  0xd4   : > { %v850_v54 = vadd.f32 %v846_v49, %v832_v47  ;;  %v851_v55 = vadd.f32 %v847_v52, %v833_v48 }
  0xd6   : > { %v854_v56 = vcombine.low %v850_v54, %v851_v55  ;;  %v877_v57 = vsel %vm876_vm1, %v850_v54, 0.0  ;;  %v878_v23 = vsel %vm876_vm1, %v851_v55, 0.0  ;;  %v886_v58 = vmul.f32 %v850_v54, %v850_v54 }
  0xd7   : > { %v879_v59 = vadd.f32 %v878_v23, %v877_v57  ;;  %v887_v60 = vmul.f32 %v851_v55, %v851_v55 }
  0xd8   : > { %v861_v61 = vrot.slane %v854_v56, %v860_v53  ;;  %v888_v50 = vsel %vm876_vm1, %v886_v58, 0.0 }
  0xd9   : > { %880 = vadd.xlane.f32.xlu1 %v879_v59  ;;  %v889_v51 = vsel %vm876_vm1, %v887_v60, 0.0 }
  0xda   : > { %v868_v62 = vrot.slane %v861_v61, %v860_v53  ;;  %v890_v63 = vadd.f32 %v889_v51, %v888_v50 }
  0xdc   : > { %874 = vst.msk [vmem:[%s1312_s13] sm:$0x3] %vm872_vm2, %v868_v62  ;;  %891 = vadd.xlane.f32.xlu0 %v890_v63  ;;  %s1124_s13 = scalar_lea.vmem %s915_s29, 16 }
  0xdd   : > { %p1125_p7 = scmp.ne.s32.totalorder %s915_s29, %s1124_s13  ;;  %p1132_p11 = scmp.lt.s32.totalorder %s1130_s20, %s1124_s13 }
  0xdf   : > { %p1126_p8 = pnand %p1125_p7, %p1369_p6  ;;  %p1133_p12 = por %p1132_p11, %p1131_p10 }
  0xe1   : > { %p1127_p9 = pneg %p1126_p8 }
  0xe3   : > { %p1134_p13 = pnand %p1133_p12, %p1127_p9 }
 0x166   : > { %v881_v0 = vpop.xlane.xlu1 %880 }
 0x167   : > { %v882_v16 = vadd.f32 %v881_v0, %v875_v17 }
 0x169   : > { %v892_v2 = vpop.xlane.xlu0 %891  ;;  %884 = vst.msk [vmem:[#allocation2] sm:$0x1] %vm883_vm3, %v882_v16 }
 0x16a   : > { %v893_v3 = vadd.f32 %v892_v2, %v885_v1 }
 0x16b   : > { %1137 = shalt.err (!%p1134_p13)
}
 0x16c   : > { %s1138_s25 = scalar_lea.hbm %s1446_s10, 16 }
 0x16d   : > { %p1139_p0 = scmp.ne.s32.totalorder %s1446_s10, %s1138_s25  ;;  %p1144_p3 = scmp.lt.u32.totalorder %s1138_s25, %s1446_s10 }
 0x16f   : > { %p1140_p1 = pnand %p1139_p0, %p1369_p6 }
 0x171   : > { %p1141_p2 = pneg %p1140_p1 }
 0x173   : > { %p1146_p4 = pnand %p1144_p3, %p1141_p2 }
 0x175   : > { %1149 = shalt.err (!%p1146_p4)
}
 0x176   : > { %1061 = dma.vmem_to_hbm [thread:$0]  (%p1369_p6), %s915_s29, 16, %s1446_s10, [#allocation3]   ;;  %894 = vst.msk [vmem:[#allocation4] sm:$0x1] %vm883_vm3, %v893_v3 }
 0x177   : > { %s1150_s26 = scalar_lea.vmem %s1374_s22, 16  ;;  %s1156_s17 = scalar_lea.vmem %s1374_s22, 32 }
 0x178   : > { %p1151_p5 = scmp.ne.s32.totalorder %s1374_s22, %s1150_s26  ;;  %p1157_p9 = scmp.lt.s32.totalorder %s1374_s22, %s1374_s22 }
 0x179   : > { %p1158_p10 = scmp.lt.s32.totalorder %s1156_s17, %s1150_s26 }
 0x17a   : > { %p1152_p7 = pnand %p1151_p5, %p1369_p6 }
 0x17b   : > { %p1159_p11 = por %p1158_p10, %p1157_p9 }
 0x17c   : > { %p1153_p8 = pneg %p1152_p7 }
 0x17e   : > { %p1160_p12 = pnand %p1159_p11, %p1153_p8 }
 0x180   : > { %1163 = shalt.err (!%p1160_p12)
}
 0x181   : > { %s1164_s23 = scalar_lea.hbm %s1447_s11, 16 }
 0x182   : > { %p1165_p13 = scmp.ne.s32.totalorder %s1447_s11, %s1164_s23  ;;  %p1170_p2 = scmp.lt.u32.totalorder %s1164_s23, %s1447_s11 }
 0x184   : > { %p1166_p0 = pnand %p1165_p13, %p1369_p6 }
 0x186   : > { %p1167_p1 = pneg %p1166_p0 }
 0x188   : > { %p1172_p3 = pnand %p1170_p2, %p1167_p1 }
 0x18a   : > { %1175 = shalt.err (!%p1172_p3)
}
 0x18b   : > { %1063 = dma.vmem_to_hbm [thread:$0]  (%p1369_p6), %s1374_s22, 16, %s1447_s11, [#allocation5]  }
 0x18c   : > { %1189 = dma.done.wait (%p1369_p6), [#allocation3], 16  }
 0x18d   : > { %1191 = vsyncadd (%p1369_p6), [#allocation3], 4294967280 }
 0x18e   : > { %1193 = dma.done.wait (%p1369_p6), [#allocation5], 16  }
 0x18f   : > { %1195 = vsyncadd (%p1369_p6), [#allocation5], 4294967280 }
 0x190 PF: > { %s24_s19 = sadd.s32 1, %s1206_s19   ;;  %s1449_s17 = smov %s1202_s18 }
 0x191   : > { %p21_p4 = scmp.ge.s32.totalorder %s24_s19, 4   ;;  %s1450_s18 = smov %s1452_s21 }
 0x193   :  { %23 = sbr.rel (!%p21_p4) target bundleno = 3 (0x3), region = 110 }
 0x19a   :  { %953 = vsyncpa [#allocation3], 1 }
 0x19b   :  { %955 = vsyncpa [#allocation3 + $0x1], 1 }
 0x19c   :  { %956 = vsyncpa [#allocation5], 1 }

</bundles_post_ra>
